<compile_context>
chip_gen: v7x
topology: tpu7x:2x2x1
jax: 0.10.0
libtpu: 0.0.40
codegen_flags: <defaults>
</compile_context>

<pallas_src>
import math

import jax
import jax.numpy as jnp
from jax.experimental import pallas as pl
from jax.experimental.pallas import tpu as pltpu

BN_EPS = 1e-5


def _round_up(v, m):
    return (v + m - 1) // m * m


def gin_conv(adj, x, params, *, tm=256, tk=256,
             compute_dtype=jnp.float32, y_dtype=jnp.float32,
             xs_resident=None):
    """GINConv forward.

    adj: [N, N] dense adjacency, adj[dst, src] = multiplicity of edge src->dst.
    x:   [N, D] node features.
    """
    N, D = x.shape
    assert adj.shape == (N, N)

    f32 = jnp.float32
    # Keep tm == tk to avoid lcm over-padding on small graphs.
    n_pad = _round_up(N, math.lcm(tm, tk))
    d_pad = _round_up(D, 128)                       # lane-dense feature dim
    n_row_tiles = n_pad // tm
    n_src_tiles = n_pad // tk

    # ---- host-side padding / layout plumbing (weights pre-transposed) -------
    # bf16 adjacency: exact for integer multiplicities <= 256, halves HBM bytes.
    a_p = jnp.zeros((n_pad, n_pad), jnp.bfloat16).at[:N, :N].set(
        adj.astype(jnp.bfloat16))
    x_p = jnp.zeros((n_pad, d_pad), f32).at[:N, :D].set(x.astype(f32))
    msg_p = jnp.maximum(x_p, 0.0).astype(compute_dtype)   # relu(x), computed once
    w1t = jnp.zeros((d_pad, d_pad), f32).at[:D, :D].set(params["w1"].astype(f32).T)
    w2t = jnp.zeros((d_pad, d_pad), f32).at[:D, :D].set(params["w2"].astype(f32).T)
    b2 = jnp.zeros((1, d_pad), f32).at[:, :D].set(params["b2"].reshape(1, D).astype(f32))
    gamma = jnp.zeros((1, d_pad), f32).at[:, :D].set(params["gamma"].reshape(1, D).astype(f32))
    beta = jnp.zeros((1, d_pad), f32).at[:, :D].set(params["beta"].reshape(1, D).astype(f32))
    eps = params["eps"].reshape(1, 1).astype(f32)
    # NOTE: params["b1"] (Linear1 bias) is absorbed by the training-mode
    # BatchNorm mean subtraction and never needs to be materialized.

    w1t = w1t.astype(compute_dtype)
    w2t = w2t.astype(compute_dtype)

    if xs_resident is None:
        # Keep the resident relu(x) slab (double-buffered by the pipeline) well
        # under the 32 MiB scoped-VMEM limit (v7x only has 64 MiB physical).
        xs_resident = n_pad * d_pad * jnp.dtype(compute_dtype).itemsize <= (8 << 20)

    # ---------------- stage 1: aggregation + combine + Linear1 ---------------
    # grid = (row tiles [parallel], src tiles [arbitrary reduction, innermost])
    def stage1_kernel(eps_ref, a_ref, xs_ref, xd_ref, w1t_ref,
                      y_ref, stats_ref, acc_ref):
        k = pl.program_id(1)              # reduction (source-tile) index
        eps_val = eps_ref[0, 0]           # scalar read kept at top level

        @pl.when(k == 0)
        def _init():
            acc_ref[...] = jnp.zeros_like(acc_ref)

        # message tile relu(x)[k*tk:(k+1)*tk, :] (resident slab or streamed tile)
        if xs_resident:
            msg = xs_ref[pl.ds(k * tk, tk), :]
        else:
            msg = xs_ref[...]
        # aggregation new_x = A @ relu(x); f32 accumulation on the MXU
        acc_ref[...] += jnp.dot(a_ref[...].astype(compute_dtype), msg,
                                preferred_element_type=jnp.float32)

        @pl.when(k == n_src_tiles - 1)
        def _finalize():
            h = (1.0 + eps_val) * xd_ref[...] + acc_ref[...]
            # Linear1 WITHOUT bias (absorbed by BN); padded rows stay exactly 0.
            y32 = jnp.dot(h.astype(compute_dtype), w1t_ref[...],
                          preferred_element_type=jnp.float32)
            y_ref[...] = y32.astype(y_ref.dtype)
            # single-pass BN partial statistics in f32 (before any downcast);
            # padded rows are zero, so no masking is needed.  Direct slice
            # stores (no concatenate relayout).
            stats_ref[0, 0:1, :] = jnp.sum(y32, axis=0, keepdims=True)
            stats_ref[0, 1:2, :] = jnp.sum(y32 * y32, axis=0, keepdims=True)

    xs_spec = (pl.BlockSpec((n_pad, d_pad), lambda i, k: (0, 0)) if xs_resident
               else pl.BlockSpec((tk, d_pad), lambda i, k: (k, 0)))

    y_full, stats = pl.pallas_call(
        stage1_kernel,
        out_shape=(
            jax.ShapeDtypeStruct((n_pad, d_pad), y_dtype),                # y = h @ W1^T
            jax.ShapeDtypeStruct((n_row_tiles, 2, d_pad), jnp.float32),   # [sum, sumsq]
        ),
        grid=(n_row_tiles, n_src_tiles),
        in_specs=[
            pl.BlockSpec((1, 1), lambda i, k: (0, 0),
                         memory_space=pltpu.MemorySpace.SMEM),    # eps scalar
            pl.BlockSpec((tm, tk), lambda i, k: (i, k)),          # A tile (bf16)
            xs_spec,                                              # relu(x) (src side)
            pl.BlockSpec((tm, d_pad), lambda i, k: (i, 0)),       # x (dest side, f32)
            pl.BlockSpec((d_pad, d_pad), lambda i, k: (0, 0)),    # W1^T (resident)
        ],
        out_specs=(
            pl.BlockSpec((tm, d_pad), lambda i, k: (i, 0)),
            pl.BlockSpec((1, 2, d_pad), lambda i, k: (i, 0, 0)),
        ),
        scratch_shapes=[pltpu.VMEM((tm, d_pad), jnp.float32)],    # aggregation acc
        compiler_params=pltpu.CompilerParams(
            dimension_semantics=("parallel", "arbitrary"),
            vmem_limit_bytes=32 * 1024 * 1024),
    )(eps, a_p, msg_p, x_p, w1t)

    # -------- BN finalize: tiny jnp epilogue, hoisted out of stage 2 ---------
    inv_n = 1.0 / N
    mean = jnp.sum(stats[:, 0, :], axis=0) * inv_n                       # (d_pad,)
    # single-pass E[y^2]-E[y]^2 (clamped); acceptable at this scale.
    var = jnp.maximum(jnp.sum(stats[:, 1, :], axis=0) * inv_n - mean * mean, 0.0)
    inv_std = jax.lax.rsqrt(var + BN_EPS)
    bn_scale = gamma * inv_std                                           # (1, d_pad)
    bn_shift = beta - mean * gamma * inv_std                             # (1, d_pad)

    # ---------------- stage 2: BN-apply + ReLU + Linear2 ---------------------
    def stage2_kernel(y_ref, scale_ref, shift_ref, w2t_ref, b2_ref, out_ref):
        act = jnp.maximum(
            y_ref[...].astype(jnp.float32) * scale_ref[...] + shift_ref[...], 0.0)
        out_ref[...] = jnp.dot(act.astype(compute_dtype), w2t_ref[...],
                               preferred_element_type=jnp.float32) + b2_ref[...]

    out_full = pl.pallas_call(
        stage2_kernel,
        out_shape=jax.ShapeDtypeStruct((n_pad, d_pad), jnp.float32),
        grid=(n_row_tiles,),
        in_specs=[
            pl.BlockSpec((tm, d_pad), lambda i: (i, 0)),         # y tile
            pl.BlockSpec((1, d_pad), lambda i: (0, 0)),          # bn_scale
            pl.BlockSpec((1, d_pad), lambda i: (0, 0)),          # bn_shift
            pl.BlockSpec((d_pad, d_pad), lambda i: (0, 0)),      # W2^T (resident)
            pl.BlockSpec((1, d_pad), lambda i: (0, 0)),          # b2
        ],
        out_specs=pl.BlockSpec((tm, d_pad), lambda i: (i, 0)),
        compiler_params=pltpu.CompilerParams(
            dimension_semantics=("parallel",),
            vmem_limit_bytes=32 * 1024 * 1024),
    )(y_full, bn_scale, bn_shift, w2t, b2)

    return out_full[:N, :D]


def init_params(key, emb_dim):
    """Deterministic init mirroring the PyTorch module's shapes / default inits."""
    k1, k2, k3, k4 = jax.random.split(key, 4)
    bound = 1.0 / jnp.sqrt(emb_dim)
    return {
        "w1": jax.random.uniform(k1, (emb_dim, emb_dim), jnp.float32, -bound, bound),
        "b1": jax.random.uniform(k2, (1, emb_dim), jnp.float32, -bound, bound),
        "gamma": jnp.ones((1, emb_dim), jnp.float32),
        "beta": jnp.zeros((1, emb_dim), jnp.float32),
        "w2": jax.random.uniform(k3, (emb_dim, emb_dim), jnp.float32, -bound, bound),
        "b2": jax.random.uniform(k4, (1, emb_dim), jnp.float32, -bound, bound),
        "eps": jnp.zeros((1,), jnp.float32),  # nn.Parameter(torch.Tensor([0]))
    }


def gin_conv_ref(adj, x, params):
    """Pure-JAX reference for correctness checking."""
    new_x = adj @ jnp.maximum(x, 0.0)
    h = (1.0 + params["eps"][0]) * x + new_x
    y = h @ params["w1"].T + params["b1"]
    mean = jnp.mean(y, axis=0, keepdims=True)
    var = jnp.mean((y - mean) ** 2, axis=0, keepdims=True)
    y = (y - mean) / jnp.sqrt(var + BN_EPS) * params["gamma"] + params["beta"]
    y = jnp.maximum(y, 0.0)
    return y @ params["w2"].T + params["b2"]


if __name__ == "__main__":
    # Accurate f32 matmuls for the XLA reference so it matches the kernel's
    # f32 accumulation on real TPU hardware as well.
    jax.config.update("jax_default_matmul_precision", "highest")

    key = jax.random.PRNGKey(0)
    k_feat, k_src, k_dst, k_param = jax.random.split(key, 4)

    N = 200    # nodes  (not a multiple of the tile -> exercises row padding)
    E = 600    # directed edges
    EMB = 64   # emb_dim (padded to 128 lanes inside the wrapper)

    # Deterministic random graph -> dense adjacency A[dst, src] (multi-edges ok).
    src = jax.random.randint(k_src, (E,), 0, N)
    dst = jax.random.randint(k_dst, (E,), 0, N)
    adj = jnp.zeros((N, N), jnp.float32).at[dst, src].add(1.0)

    x = jax.random.normal(k_feat, (N, EMB), jnp.float32)
    params = init_params(k_param, EMB)

    ref = gin_conv_ref(adj, x, params)

    # (a) small tiles: exercises the multi-tile reduction + resident relu(x) path
    out_a = jax.block_until_ready(gin_conv(adj, x, params, tm=128, tk=128))
    # (b) default v6e/v7x tiles with the streamed relu(x) fallback path
    out_b = jax.block_until_ready(gin_conv(adj, x, params, xs_resident=False))

    for out in (out_a, out_b):
        assert out.shape == (N, EMB)
        err = float(jnp.max(jnp.abs(out - ref)))
        assert jnp.allclose(out, ref, atol=1e-4, rtol=1e-4), \
            f"mismatch vs reference, max|err|={err}"
    print("KERNEL_OK")
</pallas_src>

<mosaic_0001>
module attributes {stable_mosaic.version = 11 : i64} {
  func.func @stage1_kernel(%arg0: i32, %arg1: i32, %arg2: memref<1x1xf32, #tpu.memory_space<smem>>, %arg3: memref<128x128xbf16, #tpu.memory_space<vmem>>, %arg4: memref<256x128xf32, #tpu.memory_space<vmem>>, %arg5: memref<128x128xf32, #tpu.memory_space<vmem>>, %arg6: memref<128x128xf32, #tpu.memory_space<vmem>>, %arg7: memref<128x128xf32, #tpu.memory_space<vmem>>, %arg8: memref<1x2x128xf32, #tpu.memory_space<vmem>>, %arg9: memref<128x128xf32, #tpu.memory_space<vmem>>) attributes {dimension_semantics = [#tpu.dimension_semantics<parallel>, #tpu.dimension_semantics<arbitrary>], iteration_bounds = array<i64: 2, 2>, scalar_prefetch = 0 : i64, scratch_operands = 1 : i64, tpu.core_type = #tpu.core_type<tc>, window_params = [{transform_indices = @transform_0, window_bounds = array<i64: 1, 1>}, {transform_indices = @transform_1, window_bounds = array<i64: 128, 128>}, {pipeline_mode = #tpu.pipeline_mode<synchronous>, transform_indices = @transform_2, window_bounds = array<i64: 256, 128>}, {transform_indices = @transform_3, window_bounds = array<i64: 128, 128>}, {pipeline_mode = #tpu.pipeline_mode<synchronous>, transform_indices = @transform_4, window_bounds = array<i64: 128, 128>}, {transform_indices = @transform_5, window_bounds = array<i64: 128, 128>}, {transform_indices = @transform_6, window_bounds = array<i64: 1, 2, 128>}]} {
    %c0 = arith.constant 0 : index
    %c0_0 = arith.constant 0 : index
    %0 = memref.load %arg2[%c0, %c0_0] : memref<1x1xf32, #tpu.memory_space<smem>>
    %c0_i32 = arith.constant 0 : i32
    %1 = arith.cmpi eq, %arg1, %c0_i32 : i32
    %2 = arith.extui %1 : i1 to i32
    %c0_i32_1 = arith.constant 0 : i32
    %3 = arith.cmpi ne, %2, %c0_i32_1 : i32
    scf.if %3 {
      %cst_10 = arith.constant 0.000000e+00 : f32
      %16 = vector.broadcast %cst_10 : f32 to vector<128x128xf32>
      %c0_11 = arith.constant 0 : index
      %c0_12 = arith.constant 0 : index
      %17 = vector.load %arg9[%c0_11, %c0_12] : memref<128x128xf32, #tpu.memory_space<vmem>>, vector<128x128xf32>
      tpu.vector_store %arg9[%c0_11, %c0_12], %16 {strides = array<i32>} : memref<128x128xf32, #tpu.memory_space<vmem>>, vector<128x128xf32>,
    } else {
    }
    %c128_i32 = arith.constant 128 : i32
    %4 = arith.muli %arg1, %c128_i32 : i32
    %5 = arith.index_cast %4 : i32 to index
    %c0_2 = arith.constant 0 : index
    %6 = vector.load %arg4[%5, %c0_2] : memref<256x128xf32, #tpu.memory_space<vmem>>, vector<128x128xf32>
    %c0_3 = arith.constant 0 : index
    %c0_4 = arith.constant 0 : index
    %7 = vector.load %arg9[%c0_3, %c0_4] : memref<128x128xf32, #tpu.memory_space<vmem>>, vector<128x128xf32>
    %c0_5 = arith.constant 0 : index
    %c0_6 = arith.constant 0 : index
    %8 = vector.load %arg3[%c0_5, %c0_6] : memref<128x128xbf16, #tpu.memory_space<vmem>>, vector<128x128xbf16>
    %9 = arith.extf %8 : vector<128x128xbf16> to vector<128x128xf32>
    %cst = arith.constant dense<0.000000e+00> : vector<128x128xf32>
    %10 = tpu.matmul %9, %6, %cst {dimension_numbers = #tpu.dot_dimension_numbers<[1], [0], [0], [1], [0, 0, 1, 1], [], []>, precision = #tpu.contract_precision<fp32>} : vector<128x128xf32>, vector<128x128xf32>, vector<128x128xf32> -> vector<128x128xf32>
    %11 = arith.addf %7, %10 : vector<128x128xf32>
    %c0_7 = arith.constant 0 : index
    %c0_8 = arith.constant 0 : index
    %12 = vector.load %arg9[%c0_7, %c0_8] : memref<128x128xf32, #tpu.memory_space<vmem>>, vector<128x128xf32>
    tpu.vector_store %arg9[%c0_7, %c0_8], %11 {strides = array<i32>} : memref<128x128xf32, #tpu.memory_space<vmem>>, vector<128x128xf32>,
    %c1_i32 = arith.constant 1 : i32
    %13 = arith.cmpi eq, %arg1, %c1_i32 : i32
    %14 = arith.extui %13 : i1 to i32
    %c0_i32_9 = arith.constant 0 : i32
    %15 = arith.cmpi ne, %14, %c0_i32_9 : i32
    scf.if %15 {
      %cst_10 = arith.constant 1.000000e+00 : f32
      %16 = arith.addf %cst_10, %0 : f32
      %c0_11 = arith.constant 0 : index
      %c0_12 = arith.constant 0 : index
      %17 = vector.load %arg5[%c0_11, %c0_12] : memref<128x128xf32, #tpu.memory_space<vmem>>, vector<128x128xf32>
      %18 = vector.broadcast %16 : f32 to vector<128x128xf32>
      %19 = arith.mulf %18, %17 : vector<128x128xf32>
      %c0_13 = arith.constant 0 : index
      %c0_14 = arith.constant 0 : index
      %20 = vector.load %arg9[%c0_13, %c0_14] : memref<128x128xf32, #tpu.memory_space<vmem>>, vector<128x128xf32>
      %21 = arith.addf %19, %20 : vector<128x128xf32>
      %c0_15 = arith.constant 0 : index
      %c0_16 = arith.constant 0 : index
      %22 = vector.load %arg6[%c0_15, %c0_16] : memref<128x128xf32, #tpu.memory_space<vmem>>, vector<128x128xf32>
      %cst_17 = arith.constant dense<0.000000e+00> : vector<128x128xf32>
      %23 = tpu.matmul %21, %22, %cst_17 {dimension_numbers = #tpu.dot_dimension_numbers<[1], [0], [0], [1], [0, 0, 1, 1], [], []>, precision = #tpu.contract_precision<fp32>} : vector<128x128xf32>, vector<128x128xf32>, vector<128x128xf32> -> vector<128x128xf32>
      %c0_18 = arith.constant 0 : index
      %c0_19 = arith.constant 0 : index
      %24 = vector.load %arg7[%c0_18, %c0_19] : memref<128x128xf32, #tpu.memory_space<vmem>>, vector<128x128xf32>
      tpu.vector_store %arg7[%c0_18, %c0_19], %23 {strides = array<i32>} : memref<128x128xf32, #tpu.memory_space<vmem>>, vector<128x128xf32>,
      %cst_20 = arith.constant dense<0.000000e+00> : vector<128xf32>
      %25 = vector.multi_reduction <add>, %23, %cst_20 [0] : vector<128x128xf32> to vector<128xf32>
      %26 = vector.shape_cast %25 : vector<128xf32> to vector<1x128xf32>
      %c0_21 = arith.constant 0 : index
      %c0_22 = arith.constant 0 : index
      %c0_23 = arith.constant 0 : index
      %27 = vector.load %arg8[%c0_21, %c0_22, %c0_23] : memref<1x2x128xf32, #tpu.memory_space<vmem>>, vector<1x1x128xf32>
      %28 = vector.shape_cast %27 : vector<1x1x128xf32> to vector<1x128xf32>
      %29 = vector.shape_cast %26 : vector<1x128xf32> to vector<1x1x128xf32>
      tpu.vector_store %arg8[%c0_21, %c0_22, %c0_23], %29 {strides = array<i32>} : memref<1x2x128xf32, #tpu.memory_space<vmem>>, vector<1x1x128xf32>,
      %30 = arith.mulf %23, %23 : vector<128x128xf32>
      %cst_24 = arith.constant dense<0.000000e+00> : vector<128xf32>
      %31 = vector.multi_reduction <add>, %30, %cst_24 [0] : vector<128x128xf32> to vector<128xf32>
      %32 = vector.shape_cast %31 : vector<128xf32> to vector<1x128xf32>
      %c0_25 = arith.constant 0 : index
      %c1 = arith.constant 1 : index
      %c0_26 = arith.constant 0 : index
      %33 = vector.load %arg8[%c0_25, %c1, %c0_26] : memref<1x2x128xf32, #tpu.memory_space<vmem>>, vector<1x1x128xf32>
      %34 = vector.shape_cast %33 : vector<1x1x128xf32> to vector<1x128xf32>
      %35 = vector.shape_cast %32 : vector<1x128xf32> to vector<1x1x128xf32>
      tpu.vector_store %arg8[%c0_25, %c1, %c0_26], %35 {strides = array<i32>} : memref<1x2x128xf32, #tpu.memory_space<vmem>>, vector<1x1x128xf32>,
    } else {
    }
    return
  }
  func.func @transform_0(%arg0: i32, %arg1: i32) -> (i32, i32) {
    %c0_i32 = arith.constant 0 : i32
    %c0_i32_0 = arith.constant 0 : i32
    %c0_i32_1 = arith.constant 0 : i32
    return %c0_i32, %c0_i32_0 : i32, i32
  }
  func.func @transform_1(%arg0: i32, %arg1: i32) -> (i32, i32) {
    %c0_i32 = arith.constant 0 : i32
    return %arg0, %arg1 : i32, i32
  }
  func.func @transform_2(%arg0: i32, %arg1: i32) -> (i32, i32) {
    %c0_i32 = arith.constant 0 : i32
    %c0_i32_0 = arith.constant 0 : i32
    %c0_i32_1 = arith.constant 0 : i32
    return %c0_i32, %c0_i32_0 : i32, i32
  }
  func.func @transform_3(%arg0: i32, %arg1: i32) -> (i32, i32) {
    %c0_i32 = arith.constant 0 : i32
    %c0_i32_0 = arith.constant 0 : i32
    return %arg0, %c0_i32 : i32, i32
  }
  func.func @transform_4(%arg0: i32, %arg1: i32) -> (i32, i32) {
    %c0_i32 = arith.constant 0 : i32
    %c0_i32_0 = arith.constant 0 : i32
    %c0_i32_1 = arith.constant 0 : i32
    return %c0_i32, %c0_i32_0 : i32, i32
  }
  func.func @transform_5(%arg0: i32, %arg1: i32) -> (i32, i32) {
    %c0_i32 = arith.constant 0 : i32
    %c0_i32_0 = arith.constant 0 : i32
    return %arg0, %c0_i32 : i32, i32
  }
  func.func @transform_6(%arg0: i32, %arg1: i32) -> (i32, i32, i32) {
    %c0_i32 = arith.constant 0 : i32
    %c0_i32_0 = arith.constant 0 : i32
    %c0_i32_1 = arith.constant 0 : i32
    return %arg0, %c0_i32, %c0_i32_0 : i32, i32, i32
  }
}

</mosaic_0001>

<bundles_post_ra>
// kernel: tpu_custom_call.1
= control target key start
LH: loop header
LB: loop body
LE: loop exit
PB: predicated region body
PF: predicated region fallthrough
CT: control target
= control target key end

     0   :  { %s7011_s0 = inlined_call_operand.<no memory space> [shape: f32[1,1], index: 0, kind: input, shape index: {}]   ;;  %s7012_s1 = inlined_call_operand.hbm [shape: bf16[256,256], index: 1, kind: input, shape index: {}]   ;;  %s7013_s2 = inlined_call_operand.hbm [shape: f32[256,128], index: 2, kind: input, shape index: {}]   ;;  %s7014_s3 = inlined_call_operand.hbm [shape: f32[256,128], index: 3, kind: input, shape index: {}]   ;;  %s7015_s4 = inlined_call_operand.hbm [shape: f32[128,128], index: 4, kind: input, shape index: {}]   ;;  %s7016_s5 = inlined_call_operand.hbm [shape: f32[256,128], index: 5, kind: output, shape index: {0}]   ;;  %s7017_s6 = inlined_call_operand.hbm [shape: f32[2,2,128], index: 6, kind: output, shape index: {1}]  }
   0x1   :  { %7124 = sst [smem:[#allocation68_spill]] %s7012_s1 }
   0x2   :  { %7125 = sst [smem:[#allocation69_spill]] %s7013_s2 }
   0x3   :  { %7126 = sst [smem:[#allocation70_spill]] %s7016_s5 }
   0x4   :  { %7127 = sst [smem:[#allocation71_spill]] %s7017_s6 }
   0x5   :  { %12 = sst [smem:[#allocation3]] %s7011_s0 }
   0x6   :  { %13 = vsyncpa [#allocation5], 0 }
   0x7   :  { %15 = vsyncpa [#allocation5 + $0x1], 0 }
   0x8   :  { %16 = vsyncpa [#allocation8], 0 }
   0x9   :  { %17 = vsyncpa [#allocation6], 0 }
   0xa   :  { %19 = vsyncpa [#allocation6 + $0x1], 0 }
   0xb   :  { %20 = vsyncpa [#allocation13], 0 }
   0xc   :  { %22 = vsyncpa [#allocation13 + $0x1], 0  ;;  %s5462_s23 = smov 0   ;;  %s5464_s24 = smov 0  }
   0xd   :  { %s5466_s25 = smov 0   ;;  %s5468_s26 = smov 0  }
   0xe   :  { %s5470_s27 = smov 0   ;;  %s5472_s28 = smov 0  }
   0xf   :  { %s5474_s0 = smov 0   ;;  %s5476_s29 = smov 0  }
  0x10   :  { %s5478_s30 = smov 0   ;;  %s5480_s7 = smov 0  }
  0x11   :  { %s5482_s8 = smov 0  }
  0x12 LB: > { %7128 = sst [smem:[#allocation20_spill]] %s5369_s23  ;;  %s5516_s9 = sadd.s32 4294967295, %s5409_s8   ;;  %s5409_s8 = sphi %s5482_s8, %s28_s8   ;;  %s5405_s7 = sphi %s5480_s7, %s7325_s7   ;;  %s5401_s30 = sphi %s5478_s30, %s7316_s30   ;;  %s5397_s29 = sphi %s5476_s29, %s7324_s29   ;;  %s5393_s0 = sphi %s5474_s0, %s7315_s0   ;;  %s5389_s28 = sphi %s5472_s28, %s7323_s28   ;;  %s5385_s27 = sphi %s5470_s27, %s7322_s27   ;;  %s5381_s26 = sphi %s5468_s26, %s7321_s26   ;;  %s5377_s25 = sphi %s5466_s25, %s7320_s25   ;;  %s5373_s24 = sphi %s5464_s24, %s7319_s24   ;;  %s5369_s23 = sphi %s5462_s23, %s7318_s23  }
  0x13   : > { %7129 = sst [smem:[#allocation21_spill]] %s5393_s0  ;;  %s3316_s10 = sadd.s32 4294967294, %s5409_s8  }
  0x14   : > { %7130 = sst [smem:[#allocation22_spill]] %s5397_s29  ;;  %p83_p0 = scmp.ne.s32.totalorder %s5385_s27, %s5381_s26 }
  0x15   : > { %7131 = sst [smem:[#allocation23_spill]] %s5401_s30  ;;  %p7018_p1 = scmp.eq.s32.totalorder %s5516_s9, 0 }
  0x16   : > { %p130_p2 = scmp.ne.s32.totalorder %s5373_s24, %s5369_s23  ;;  %p181_p5 = scmp.eq.s32.totalorder %s3316_s10, 3 }
  0x17   : > { %p5526_p4 = por %p7018_p1, %p83_p0  ;;  %p3317_p7 = scmp.ge.s32.totalorder %s5409_s8, 1 }
  0x18   : > { %p5532_p6 = por %p130_p2, %p7018_p1  ;;  %p5537_p8 = por %p181_p5, %p130_p2 }
  0x19   : > { %s7132_s11 = scalar_select %p5526_p4, 1, 0 }
  0x1a   : > { %s7133_s12 = scalar_select %p5532_p6, 1, 0 }
  0x1b   : > { %s7134_s13 = scalar_select %p5537_p8, 1, 0 }
  0x1c   : > { %p214_p9 = scmp.lt.s32.totalorder %s5409_s8, 5  ;;  %s5411_s15 = smov [#allocation7]  }
  0x1d   : > { %7135 = sst [smem:[#allocation24_spill]] %s7134_s13  ;;  %s229_s16 = sshll.u32 %s5411_s15, 4  ;;  %s230_s16 = int_to_ptr.vmem [resolvable:$true] %s229_s16 }
  0x1e   : > { %p5542_p10 = pnand %p3317_p7, %p214_p9  ;;  %s7138_s2 = sld [smem:[#allocation69_spill]] }
  0x20   : > { %s7136_s14 = scalar_select %p5542_p10, 1, 0 }
  0x21   : > { %p5003_p11 = pneg %p5542_p10 }
  0x23   : > { %p5550_p12 = pnand %p5003_p11, %p7018_p1 }
  0x24   : > { %s5127_s20 = scalar_lea.hbm %s7138_s2, 4096 }
  0x25   : > { %p5128_p13 = scmp.ne.s32.totalorder %s7138_s2, %s5127_s20  ;;  %p7036_p0 = pneg %p5550_p12 }
  0x26   : > { %p5134_p7 = scmp.lt.u32.totalorder %s5127_s20, %s7138_s2 }
  0x27   : > { %p5130_p2 = pnand %p7036_p0, %p5128_p13 }
  0x29   : > { %p5131_p5 = pneg %p5130_p2 }
  0x2b   : > { %p5136_p9 = pnand %p5134_p7, %p5131_p5 }
  0x2d   : > { %5139 = shalt.err (!%p5136_p9)
}
  0x2e   : > { %s5140_s15 = scalar_lea.vmem %s230_s16, 4096  ;;  %p5148_p8 = scmp.lt.s32.totalorder %s230_s16, %s230_s16 }
  0x2f   : > { %p5141_p11 = scmp.ne.s32.totalorder %s230_s16, %s5140_s15  ;;  %p5149_p6 = scmp.lt.s32.totalorder %s5140_s15, %s5140_s15 }
  0x31   : > { %p5143_p1 = pnand %p5141_p11, %p7036_p0  ;;  %p5150_p4 = por %p5149_p6, %p5148_p8 }
  0x33   : > { %p5144_p3 = pneg %p5143_p1 }
  0x35   : > { %p5151_p10 = pnand %p5150_p4, %p5144_p3 }
  0x37   : > { %5154 = shalt.err (!%p5151_p10)
}
  0x38   : > { %s7024_s18 = smov 128   ;;  %s7022_s19 = smov 8  }
  0x39   : > { %5006 = dma.hbm_to_vmem [thread:$0]  (!%p5550_p12), %s7138_s2, 4096, %s230_s16, [#allocation8], %s7024_s18, %s7024_s18, %s7022_s19  }
  0x3a   : > { %s37_s22 = sadd.s32 1, %s5401_s30  ;;  %s40_s26 = sadd.s32 1, %s5405_s7 }
  0x3b   : > { %p38_p1 = scmp.ge.s32.totalorder %s37_s22, 2  ;;  %s70_s10 = sadd.s32 1, %s5389_s28 }
  0x3c   : > { %p77_p3 = scmp.ne.s32.totalorder %s5389_s28, %s5385_s27  ;;  %p7035_p4 = scmp.eq.s32.totalorder %s5409_s8, 0 }
  0x3d   : > { %s7327_s22 = smov (%p38_p1, %s37_s22), 0  ;;  %s7329_s26 = smov (!%p38_p1, %s40_s26), %s5405_s7 }
  0x3e   : > { %7139 = sst [smem:[#allocation25_spill]] %s7327_s22  ;;  %s66_s15 = ssub.s32 %s5401_s30, %s7327_s22 }
  0x3f   : > { %p42_p6 = scmp.ge.s32.totalorder %s7329_s26, 2  ;;  %p7034_p8 = scmp.lt.s32.totalorder %s5409_s8, 4 }
  0x40   : > { %p5593_p10 = por %p7035_p4, %p77_p3  ;;  %s256_s20 = sand.u32 1, %s5409_s8  }
  0x41   : > { %s7331_s26 = smov (%p42_p6, %s7329_s26), 0  ;;  %s258_s21 = sand.u32 1, %s5389_s28  }
  0x42   : > { %7141 = sst [smem:[#allocation26_spill]] %s7331_s26  ;;  %s5603_s19 = ssub.s32 %s5405_s7, %s7331_s26 }
  0x43   : > { %s3321_s18 = sshll.u32 %s258_s21, 6  ;;  %s67_s2 = sor.u32 %s66_s15, %s5603_s19 }
  0x44   : > { %p68_p2 = scmp.eq.s32.totalorder %s67_s2, 0  ;;  %s3345_s22 = sshll.u32 %s5405_s7, 5 }
  0x45   : > { %s260_s13 = scalar_lea.vmem [#allocation4], %s3321_s18  ;;  %s266_s5 = sadd.s32 %s5401_s30, %s3345_s22 }
  0x46   : > { %s269_s23 = sshll.u32 %s260_s13, 4  ;;  %s3324_s29 = sshll.u32 %s266_s5, 6  ;;  %s5612_s23 = int_to_ptr.vmem [resolvable:$true] %s269_s23 }
  0x47   : > { %s5609_s6 = scalar_select %p68_p2, %s5389_s28, %s70_s10  }
  0x48   : > { %p5618_p5 = pnand %p7034_p8, %p5593_p10  ;;  %s7143_s1 = sld [smem:[#allocation68_spill]] }
  0x49   : > { %s5627_s13 = scalar_lea.sflag [#allocation5], %s256_s20 }
  0x4a   : > { %p5157_p9 = pneg %p5618_p5 }
  0x4e   : > { %s5625_s2 = scalar_lea.hbm %s7143_s1, %s3324_s29  ;;  %s5160_s22 = scalar_lea.hbm %s7143_s1, 4096 }
  0x4f   : > { %s5155_s5 = scalar_lea.hbm %s5625_s2, 1024  ;;  %p5161_p3 = scmp.lt.u32.totalorder %s5625_s2, %s7143_s1 }
  0x50   : > { %p5156_p7 = scmp.ne.s32.totalorder %s5625_s2, %s5155_s5  ;;  %p5162_p6 = scmp.lt.u32.totalorder %s5160_s22, %s5155_s5 }
  0x51   : > { %p5164_p2 = scmp.lt.u32.totalorder %s5155_s5, %s5625_s2 }
  0x52   : > { %p5158_p11 = pnand %p5157_p9, %p5156_p7  ;;  %p5163_p10 = por %p5162_p6, %p5161_p3 }
  0x54   : > { %p5159_p1 = pneg %p5158_p11  ;;  %p5165_p8 = por %p5164_p2, %p5163_p10 }
  0x56   : > { %p5166_p4 = pnand %p5165_p8, %p5159_p1 }
  0x58   : > { %5169 = shalt.err (!%p5166_p4)
}
  0x59   : > { %s5170_s15 = scalar_lea.vmem %s5612_s23, 1024  ;;  %s5414_s16 = smov [#allocation4]  }
  0x5a   : > { %p5171_p7 = scmp.ne.s32.totalorder %s5612_s23, %s5170_s15  ;;  %s5175_s20 = sshll.u32 %s5414_s16, 4  ;;  %s5176_s20 = int_to_ptr.vmem [resolvable:$false] %s5175_s20 }
  0x5b   : > { %s5177_s21 = scalar_lea.vmem %s5176_s20, 2048  ;;  %p5178_p0 = scmp.lt.s32.totalorder %s5612_s23, %s5176_s20 }
  0x5c   : > { %p5173_p11 = pnand %p5171_p7, %p5157_p9  ;;  %p5179_p3 = scmp.lt.s32.totalorder %s5177_s21, %s5170_s15 }
  0x5e   : > { %p5174_p13 = pneg %p5173_p11  ;;  %p5180_p6 = por %p5179_p3, %p5178_p0 }
  0x60   : > { %p5181_p10 = pnand %p5180_p6, %p5174_p13 }
  0x62   : > { %5184 = shalt.err (!%p5181_p10)
}
  0x63   : > { %s5415_s5 = smov 64   ;;  %s5416_s18 = smov 4  }
  0x64   : > { %s7144_s0 = smov 128   ;;  %s5417_s22 = smov [#allocation10]  }
  0x65   : > { %5013 = dma.hbm_to_vmem [thread:$0]  (!%p5618_p5), %s5625_s2, 1024, %s5612_s23, %s5627_s13, %s7144_s0, %s5415_s5, %s5416_s18  }
  0x66   : > { %s242_s29 = sshll.u32 %s5417_s22, 4  ;;  %s117_s10 = sadd.s32 1, %s5377_s25  ;;  %s243_s29 = int_to_ptr.vmem [resolvable:$true] %s242_s29 }
  0x67   : > { %s5185_s20 = scalar_lea.hbm %s7015_s4, 2048  ;;  %p7145_p4 = pneg %p5550_p12 }
  0x68   : > { %p5186_p0 = scmp.ne.s32.totalorder %s7015_s4, %s5185_s20  ;;  %p5192_p5 = scmp.lt.u32.totalorder %s5185_s20, %s7015_s4 }
  0x6a   : > { %p5188_p8 = pnand %p5186_p0, %p7145_p4 }
  0x6c   : > { %p5189_p13 = pneg %p5188_p8 }
  0x6e   : > { %p5194_p9 = pnand %p5192_p5, %p5189_p13 }
  0x70   : > { %5197 = shalt.err (!%p5194_p9)
}
  0x71   : > { %s5198_s23 = scalar_lea.vmem %s243_s29, 2048  ;;  %p7146_p2 = pmov %p7145_p4 }
  0x72   : > { %p5199_p1 = scmp.ne.s32.totalorder %s243_s29, %s5198_s23  ;;  %p5206_p3 = scmp.lt.s32.totalorder %s243_s29, %s243_s29 }
  0x73   : > { %p5207_p6 = scmp.lt.s32.totalorder %s5198_s23, %s5198_s23 }
  0x74   : > { %p5201_p7 = pnand %p5199_p1, %p7146_p2 }
  0x75   : > { %p5208_p10 = por %p5207_p6, %p5206_p3 }
  0x76   : > { %p5202_p11 = pneg %p5201_p7 }
  0x78   : > { %p5209_p0 = pnand %p5208_p10, %p5202_p11 }
  0x7a   : > { %5212 = shalt.err (!%p5209_p0)
}
  0x7b   : > { %s7147_s1 = smov 8   ;;  %p7148_p4 = scmp.eq.s32.totalorder %s5603_s19, 0 }
  0x7c   : > { %5009 = dma.hbm_to_vmem [thread:$0]  (!%p5550_p12), %s7015_s4, 2048, %s243_s29, [#allocation8], %s7144_s0, %s7144_s0, %s7147_s1  }
  0x7d   : > { %s5683_s5 = scalar_select %p7148_p4, %s5377_s25, %s117_s10  }
  0x7e   : > { %p124_p8 = scmp.ne.s32.totalorder %s5377_s25, %s5373_s24  ;;  %s281_s17 = sand.u32 1, %s5377_s25  }
  0x7f   : > { %s3325_s18 = sshll.u32 %s281_s17, 7  ;;  %s3346_s22 = sshll.u32 %s5405_s7, 11 }
  0x80   : > { %p7149_p13 = scmp.eq.s32.totalorder %s5409_s8, 0  ;;  %p7150_p9 = scmp.eq.s32.totalorder %s5516_s9, 3 }
  0x81   : > { %s5700_s21 = scalar_lea.hbm %s7014_s3, %s3346_s22  ;;  %s283_s19 = scalar_lea.vmem [#allocation9], %s3325_s18 }
  0x82   : > { %p126_p5 = por %p124_p8, %p7149_p13  ;;  %p5693_p1 = por %p7150_p9, %p124_p8 }
  0x83   : > { %s290_s29 = sshll.u32 %s283_s19, 4  ;;  %p7152_p12 = scmp.lt.s32.totalorder %s5409_s8, 4  ;;  %s5708_s29 = int_to_ptr.vmem [resolvable:$true] %s290_s29 }
  0x84   : > { %s5213_s26 = scalar_lea.hbm %s5700_s21, 2048  ;;  %s5218_s2 = scalar_lea.hbm %s7014_s3, 4096 }
  0x85   : > { %p5704_p2 = pnand %p7152_p12, %p126_p5  ;;  %p5214_p7 = scmp.ne.s32.totalorder %s5700_s21, %s5213_s26 }
  0x86   : > { %p5219_p10 = scmp.lt.u32.totalorder %s5700_s21, %s7014_s3  ;;  %p5220_p0 = scmp.lt.u32.totalorder %s5218_s2, %s5213_s26 }
  0x87   : > { %p5215_p11 = pneg %p5704_p2  ;;  %p5222_p8 = scmp.lt.u32.totalorder %s5213_s26, %s5700_s21 }
  0x88   : > { %p5221_p4 = por %p5220_p0, %p5219_p10 }
  0x89   : > { %p5216_p3 = pnand %p5215_p11, %p5214_p7 }
  0x8a   : > { %p5223_p13 = por %p5222_p8, %p5221_p4 }
  0x8b   : > { %p5217_p6 = pneg %p5216_p3 }
  0x8d   : > { %p5224_p5 = pnand %p5223_p13, %p5217_p6 }
  0x8f   : > { %5227 = shalt.err (!%p5224_p5)
}
  0x90   : > { %s5228_s22 = scalar_lea.vmem %s5708_s29, 2048  ;;  %s5418_s15 = smov [#allocation9]  }
  0x91   : > { %p5229_p9 = scmp.ne.s32.totalorder %s5708_s29, %s5228_s22  ;;  %s5233_s20 = sshll.u32 %s5418_s15, 4  ;;  %s5234_s20 = int_to_ptr.vmem [resolvable:$false] %s5233_s20 }
  0x92   : > { %s5235_s19 = scalar_lea.vmem %s5234_s20, 4096  ;;  %p5236_p3 = scmp.lt.s32.totalorder %s5708_s29, %s5234_s20 }
  0x93   : > { %p5231_p12 = pnand %p5229_p9, %p5215_p11  ;;  %p5237_p10 = scmp.lt.s32.totalorder %s5235_s19, %s5228_s22 }
  0x95   : > { %p5232_p7 = pneg %p5231_p12  ;;  %p5238_p0 = por %p5237_p10, %p5236_p3 }
  0x97   : > { %p5239_p4 = pnand %p5238_p0, %p5232_p7 }
  0x99   : > { %5242 = shalt.err (!%p5239_p4)
}
  0x9a   : > { %5016 = dma.hbm_to_vmem [thread:$0]  (!%p5704_p2), %s5700_s21, 2048, %s5708_s29, %s5627_s13, %s7144_s0, %s7144_s0, %s7147_s1  }
  0x9b   : > { %p7154_p11 = scmp.ne.s32.totalorder %s7136_s14, 0 }
  0x9d   : > { %302 = sbr.rel (%p7154_p11) target bundleno = 972 (0x3cc), region = 40 }
  0xa4   : > { %s304_s26 = sand.u32 1, %s5516_s9   ;;  %s306_s23 = sand.u32 1, %s5385_s27  }
  0xa5   : > { %s3329_s30 = sshll.u32 %s306_s23, 6  ;;  %s305_s2 = scalar_lea.sflag [#allocation5], %s304_s26 }
  0xa6   : > { %s5743_s17 = scalar_lea.vmem [#allocation4], %s3329_s30  ;;  %p7155_p6 = scmp.ne.s32.totalorder %s7132_s11, 0 }
  0xa8   : > { %5344 = dma.done.wait (%p7155_p6), %s305_s2, 1024  }
  0xa9   : > { %5346 = vsyncadd (%p7155_p6), %s305_s2, 4294966272  ;;  %p7156_p8 = scmp.eq.s32.totalorder %s5516_s9, 0 }
  0xab   : > { %5348 = dma.done.wait (%p7156_p8), [#allocation8], 4096   ;;  %p7157_p2 = pmov %p7156_p8 }
  0xac   : > { %s5754_s14 = sand.u32 1, %s5373_s24   ;;  %p7158_p13 = scmp.ne.s32.totalorder %s7133_s12, 0 }
  0xad   : > { %5350 = vsyncadd (%p7157_p2), [#allocation8], 4294963200  ;;  %s3331_s13 = sshll.u32 %s5754_s14, 7 }
  0xae   : > { %s5757_s0 = scalar_lea.vmem [#allocation9], %s3331_s13 }
  0xaf   : > { %5352 = dma.done.wait (%p7158_p13), %s305_s2, 2048  }
  0xb0   : > { %5354 = vsyncadd (%p7158_p13), %s305_s2, 4294965248  ;;  %p7159_p5 = pmov %p7157_p2 }
  0xb1   : > { %p7160_p9 = pmov %p7157_p2 }
  0xb2   : > { %5356 = dma.done.wait (%p7159_p5), [#allocation8], 2048  }
  0xb3   : > { %5358 = vsyncadd (%p7160_p9), [#allocation8], 4294965248  ;;  %s3334_s11 = sshll.u32 %s5754_s14, 1  ;;  %s5768_s1 = sld [smem:[#allocation3]] }
  0xb4   : > { %s5770_s21 = scalar_lea.vmem [#allocation11], %s3331_s13  ;;  %s5772_s29 = scalar_lea.vmem [#allocation12], %s3334_s11 }
  0xb5   : > { %s7161_s10 = sld [smem:[#allocation21_spill]] }
  0xbb   : > { %p3335_p12 = scmp.ne.s32.totalorder %s7161_s10, 0 }
  0xbc   : > { %v5419_v0 = vmov (!%p3335_p12), 0.0  }
  0xbd   : > { %371 = sbr.rel (%p3335_p12) target bundleno = 197 (0xc5), region = 60  ;;  %372 = vst [vmem:[#allocation2] sm:$0xff] (!%p3335_p12), %v5419_v0  ;;  %373 = vst [vmem:[#allocation2 + $0x8] sm:$0xff] (!%p3335_p12), %v5419_v0 }
  0xbe   : > { %374 = vst [vmem:[#allocation2 + $0x10] sm:$0xff] (!%p3335_p12), %v5419_v0  ;;  %375 = vst [vmem:[#allocation2 + $0x18] sm:$0xff] (!%p3335_p12), %v5419_v0 }
  0xbf   : > { %376 = vst [vmem:[#allocation2 + $0x20] sm:$0xff] (!%p3335_p12), %v5419_v0  ;;  %377 = vst [vmem:[#allocation2 + $0x28] sm:$0xff] (!%p3335_p12), %v5419_v0 }
  0xc0   : > { %378 = vst [vmem:[#allocation2 + $0x30] sm:$0xff] (!%p3335_p12), %v5419_v0  ;;  %379 = vst [vmem:[#allocation2 + $0x38] sm:$0xff] (!%p3335_p12), %v5419_v0 }
  0xc1   : > { %380 = vst [vmem:[#allocation2 + $0x40] sm:$0xff] (!%p3335_p12), %v5419_v0  ;;  %381 = vst [vmem:[#allocation2 + $0x48] sm:$0xff] (!%p3335_p12), %v5419_v0 }
  0xc2   : > { %382 = vst [vmem:[#allocation2 + $0x50] sm:$0xff] (!%p3335_p12), %v5419_v0  ;;  %383 = vst [vmem:[#allocation2 + $0x58] sm:$0xff] (!%p3335_p12), %v5419_v0 }
  0xc3   : > { %384 = vst [vmem:[#allocation2 + $0x60] sm:$0xff] (!%p3335_p12), %v5419_v0  ;;  %385 = vst [vmem:[#allocation2 + $0x68] sm:$0xff] (!%p3335_p12), %v5419_v0 }
  0xc4   : > { %386 = vst [vmem:[#allocation2 + $0x70] sm:$0xff] %v5419_v0  ;;  %387 = vst [vmem:[#allocation2 + $0x78] sm:$0xff] %v5419_v0 }
  0xc5 PF: > { %s7162_s9 = sld [smem:[#allocation21_spill]]  ;;  %v3349_v1 = vld [vmem:[%s5743_s17] sm:$0xff]   ;;  %v3380_v29 = vld [vmem:[%s5743_s17 + $0x8] sm:$0xff]   ;;  %v3381_v41 = vld [vmem:[%s5743_s17 + $0x10] sm:$0xff]  }
  0xc6   : > { %v5777_v2 = vunpack.c.l.bf16 %v3349_v1  ;;  %v5829_v27 = vunpack.c.h.bf16 %v3349_v1  ;;  %v5854_v36 = vunpack.c.l.bf16 %v3380_v29  ;;  %v5865_v40 = vunpack.c.h.bf16 %v3380_v29  ;;  %v3382_v54 = vld [vmem:[%s5743_s17 + $0x18] sm:$0xff]  }
  0xc7   : > { %v5897_v53 = vunpack.c.l.bf16 %v3381_v41  ;;  %v5918_v61 = vunpack.c.h.bf16 %v3381_v41  ;;  %v5923_v1 = vunpack.c.l.bf16 %v3382_v54 }
  0xc8   : > { %v5793_v13 = vsub.f32 %v5777_v2, %v5777_v2  ;;  %v5852_v35 = vsub.f32 %v5829_v27, %v5829_v27  ;;  %v5895_v52 = vsub.f32 %v5854_v36, %v5854_v36  ;;  %v5907_v58 = vsub.f32 %v5865_v40, %v5865_v40 }
  0xc9   : > { %7170 = vst [vmem:[#allocation34_spill] sm:$0xff] %v5918_v61  ;;  %7171 = vst [vmem:[#allocation35_spill] sm:$0xff] %v5923_v1 }
  0xca   : > { %7163 = vst [vmem:[#allocation27_spill] sm:$0xff] %v5793_v13  ;;  %v536_v20 = vand.u32 4294901760, %v5793_v13  ;;  %7165 = vst [vmem:[#allocation29_spill] sm:$0xff] %v5852_v35  ;;  %v7044_v51 = vand.u32 4294901760, %v5852_v35 }
  0xcb   : > { %s3336_s12 = sshll.u32 %s7162_s9, 7  ;;  %7167 = vst [vmem:[#allocation31_spill] sm:$0xff] %v5895_v52  ;;  %7168 = vst [vmem:[#allocation32_spill] sm:$0xff] %v5907_v58  ;;  %p3337_p7 = scmp.ne.s32.totalorder %s7162_s9, 1 }
  0xcc   : > { %s5779_s18 = scalar_lea.vmem [#allocation7], %s3336_s12  ;;  %v537_v26 = vsub.f32 %v5793_v13, %v536_v20  ;;  %3971 = vmatprep.mubr.f32.mxu0 %v536_v20  ;;  %v3384_v13 = vld [vmem:[%s5743_s17 + $0x28] sm:$0xff]  }
  0xcd   : > { %v390_v3 = vld [vmem:[%s5779_s18] sm:$0xff]  ;;  %v391_v4 = vld [vmem:[%s5779_s18 + $0x8] sm:$0xff]  ;;  %v392_v5 = vld [vmem:[%s5779_s18 + $0x10] sm:$0xff] }
  0xce   : > { %v455_v6 = vand.u32 4294901760, %v390_v3  ;;  %v458_v7 = vand.u32 4294901760, %v391_v4  ;;  %v393_v8 = vld [vmem:[%s5779_s18 + $0x18] sm:$0xff]  ;;  %v461_v9 = vand.u32 4294901760, %v392_v5  ;;  %v5786_v10 = vld [vmem:[%s5779_s18 + $0x20] sm:$0xff]  ;;  %v5789_v11 = vld [vmem:[%s5779_s18 + $0x28] sm:$0xff] }
  0xcf   : > { %v464_v12 = vand.u32 4294901760, %v393_v8  ;;  %v467_v15 = vand.u32 4294901760, %v5786_v10  ;;  %v470_v16 = vand.u32 4294901760, %v5789_v11  ;;  %v5802_v18 = vld [vmem:[%s5779_s18 + $0x30] sm:$0xff]  ;;  %v5805_v19 = vld [vmem:[%s5779_s18 + $0x38] sm:$0xff]  ;;  %v5823_v24 = vld [vmem:[%s5779_s18 + $0x40] sm:$0xff] }
  0xd0   : > { %v5795_v14 = vpack.c.bf16 %v458_v7, %v455_v6  ;;  %v473_v22 = vand.u32 4294901760, %v5802_v18  ;;  %v476_v23 = vand.u32 4294901760, %v5805_v19  ;;  %v5826_v25 = vld [vmem:[%s5779_s18 + $0x48] sm:$0xff]  ;;  %v538_v28 = vand.u32 4294901760, %v537_v26  ;;  %v5845_v33 = vld [vmem:[%s5779_s18 + $0x50] sm:$0xff]  ;;  %v5848_v34 = vld [vmem:[%s5779_s18 + $0x58] sm:$0xff] }
  0xd1   : > { %v5799_v17 = vpack.c.bf16 %v464_v12, %v461_v9  ;;  %v5818_v21 = vpack.c.bf16 %v470_v16, %v467_v15  ;;  %v479_v31 = vand.u32 4294901760, %v5823_v24  ;;  %v482_v32 = vand.u32 4294901760, %v5826_v25  ;;  %v5859_v37 = vld [vmem:[%s5779_s18 + $0x60] sm:$0xff]  ;;  %v5879_v45 = vld [vmem:[%s5779_s18 + $0x68] sm:$0xff]  ;;  %v5887_v49 = vld [vmem:[%s5779_s18 + $0x70] sm:$0xff] }
  0xd2   : > { %4444 = vmatprep.subr.bf16.mxu1 %v5795_v14  ;;  %4540 = vmatprep.subr.bf16.mxu0 %v5795_v14  ;;  %v5840_v30 = vpack.c.bf16 %v476_v23, %v473_v22  ;;  %v5861_v38 = vsub.f32 %v390_v3, %v455_v6  ;;  %v5863_v39 = vsub.f32 %v391_v4, %v458_v7  ;;  %v7046_v43 = vand.u32 4294901760, %v5845_v33  ;;  %v5890_v50 = vld [vmem:[%s5779_s18 + $0x78] sm:$0xff] }
  0xd3   : > { %4446 = vmatpush3.bf16.msra.mxu1 %v5795_v14  ;;  %4542 = vmatpush3.bf16.msra.mxu0 %v5795_v14  ;;  %v5874_v42 = vpack.c.bf16 %v482_v32, %v479_v31  ;;  %v7045_v44 = vand.u32 4294901760, %v5848_v34  ;;  %v5881_v46 = vsub.f32 %v392_v5, %v461_v9  ;;  %v5883_v47 = vsub.f32 %v393_v8, %v464_v12 }
  0xd4   : > { %4448 = vmatprep.subr.bf16.mxu1 %v5799_v17  ;;  %4544 = vmatprep.subr.bf16.mxu0 %v5799_v17  ;;  %7164 = vst [vmem:[#allocation28_spill] sm:$0xff] %v5840_v30  ;;  %v7041_v48 = vand.u32 4294901760, %v5859_v37  ;;  %v7040_v55 = vand.u32 4294901760, %v5879_v45  ;;  %v682_v56 = vand.u32 4294901760, %v5861_v38  ;;  %v689_v57 = vand.u32 4294901760, %v5863_v39 }
  0xd5   : > { %3803 = vmatprep.mubr.f32.mxu1 %v538_v28  ;;  %7166 = vst [vmem:[#allocation30_spill] sm:$0xff] %v5874_v42  ;;  %v5915_v59 = vpack.c.bf16 %v7045_v44, %v7046_v43  ;;  %v696_v60 = vand.u32 4294901760, %v5881_v46  ;;  %v7039_v62 = vand.u32 4294901760, %v5887_v49  ;;  %v7038_v63 = vand.u32 4294901760, %v5890_v50 }
  0xd6   : > { %v703_v0 = vand.u32 4294901760, %v5883_v47  ;;  %v5928_v3 = vsub.f32 %v5852_v35, %v7044_v51  ;;  %v7042_v4 = vand.u32 4294901760, %v5895_v52  ;;  %v5933_v5 = vsub.f32 %v5897_v53, %v5897_v53 }
  0xd7   : > { %4450 = vmatpush3.bf16.msra.mxu1 %v5799_v17  ;;  %4546 = vmatpush3.bf16.msra.mxu0 %v5799_v17  ;;  %7169 = vst [vmem:[#allocation33_spill] sm:$0xff] %v5915_v59  ;;  %v5941_v6 = vpack.c.bf16 %v7040_v55, %v7041_v48  ;;  %v683_v7 = vsub.f32 %v5861_v38, %v682_v56  ;;  %v7043_v9 = vand.u32 4294901760, %v5907_v58  ;;  %v5959_v28 = vunpack.c.h.bf16 %v3382_v54 }
  0xd8   : > { %4452 = vmatprep.subr.bf16.mxu1 %v5818_v21  ;;  %4548 = vmatprep.subr.bf16.mxu0 %v5818_v21  ;;  %7172 = vst [vmem:[#allocation36_spill] sm:$0xff] %v5933_v5  ;;  %v690_v8 = vsub.f32 %v5863_v39, %v689_v57  ;;  %v697_v12 = vsub.f32 %v5881_v46, %v696_v60  ;;  %v7047_v54 = vand.u32 4294901760, %v5933_v5 }
  0xd9   : > { %7173 = vst [vmem:[#allocation37_spill] sm:$0xff] %v5941_v6  ;;  %v5952_v20 = vsub.f32 %v5786_v10, %v467_v15  ;;  %v5957_v26 = vsub.f32 %v5789_v11, %v470_v16  ;;  %7174 = vst [vmem:[#allocation38_spill] sm:$0xff] %v5959_v28  ;;  %v5965_v29 = vpack.c.bf16 %v7038_v63, %v7039_v62  ;;  %v547_v11 = vand.u32 4294901760, %v5928_v3 }
  0xda   : > { %v704_v41 = vsub.f32 %v5883_v47, %v703_v0  ;;  %v5970_v10 = vsub.f32 %v5918_v61, %v5918_v61  ;;  %v5974_v15 = vsub.f32 %v5923_v1, %v5923_v1  ;;  %v5980_v16 = vsub.f32 %v5895_v52, %v7042_v4  ;;  %v3383_v4 = vld [vmem:[%s5743_s17 + $0x20] sm:$0xff]  }
  0xdb   : > { %4454 = vmatpush3.bf16.msra.mxu1 %v5818_v21  ;;  %4550 = vmatpush3.bf16.msra.mxu0 %v5818_v21  ;;  %7175 = vst [vmem:[#allocation39_spill] sm:$0xff] %v5965_v29  ;;  %v5986_v63 = vsub.f32 %v5802_v18, %v473_v22  ;;  %v684_v62 = vand.u32 4294901760, %v683_v7  ;;  %v4571_v55 = vpack.c.bf16 %v689_v57, %v682_v56  ;;  %v691_v18 = vand.u32 4294901760, %v690_v8 }
  0xdc   : > { %4456 = vmatprep.subr.bf16.mxu1 %v5840_v30  ;;  %4552 = vmatprep.subr.bf16.mxu0 %v5840_v30  ;;  %7176 = vst [vmem:[#allocation40_spill] sm:$0xff] %v5970_v10  ;;  %7177 = vst [vmem:[#allocation41_spill] sm:$0xff] %v5974_v15  ;;  %v5993_v3 = vsub.f32 %v5907_v58, %v7043_v9  ;;  %v5998_v48 = vsub.f32 %v5805_v19, %v476_v23  ;;  %v698_v22 = vand.u32 4294901760, %v697_v12 }
  0xdd   : > { %v710_v7 = vand.u32 4294901760, %v5952_v20  ;;  %v717_v56 = vand.u32 4294901760, %v5957_v26  ;;  %v705_v57 = vand.u32 4294901760, %v704_v41  ;;  %v6009_v19 = vsub.f32 %v5959_v28, %v5959_v28 }
  0xde   : > { %v556_v23 = vand.u32 4294901760, %v5980_v16  ;;  %v6015_v8 = vsub.f32 %v5933_v5, %v7047_v54  ;;  %v724_v12 = vand.u32 4294901760, %v5986_v63  ;;  %v6018_v44 = vunpack.c.l.bf16 %v3383_v4 }
  0xdf   : > { %4458 = vmatpush3.bf16.msra.mxu1 %v5840_v30  ;;  %4554 = vmatpush3.bf16.msra.mxu0 %v5840_v30  ;;  %7178 = vst [vmem:[#allocation42_spill] sm:$0xff] %v6009_v19  ;;  %v6022_v41 = vpack.c.bf16 %v703_v0, %v696_v60  ;;  %v731_v43 = vand.u32 4294901760, %v5998_v48  ;;  %v6028_v16 = vsub.f32 %v5823_v24, %v479_v31  ;;  %v565_v60 = vand.u32 4294901760, %v5993_v3 }
  0xe0   : > { %4460 = vmatprep.subr.bf16.mxu1 %v5874_v42  ;;  %4556 = vmatprep.subr.bf16.mxu0 %v5874_v42  ;;  %7179 = vst [vmem:[#allocation43_spill] sm:$0xff] %v6018_v44  ;;  %v6033_v54 = vsub.f32 %v5826_v25, %v482_v32  ;;  %v4475_v51 = vpack.c.bf16 %v691_v18, %v684_v62  ;;  %v7180_v24 = vand.u32 4294901760, %v5970_v10  ;;  %v7181_v25 = vand.u32 4294901760, %v5974_v15 }
  0xe1   : > { %v711_v0 = vsub.f32 %v5952_v20, %v710_v7  ;;  %v718_v9 = vsub.f32 %v5957_v26, %v717_v56  ;;  %v574_v3 = vand.u32 4294901760, %v6015_v8  ;;  %v725_v18 = vsub.f32 %v5986_v63, %v724_v12 }
  0xe2   : > { %v6044_v31 = vsub.f32 %v5970_v10, %v7180_v24  ;;  %v6049_v32 = vsub.f32 %v5974_v15, %v7181_v25  ;;  %v6065_v8 = vunpack.c.l.bf16 %v3384_v13  ;;  %v7183_v28 = vand.u32 4294901760, %v5848_v34 }
  0xe3   : > { %4462 = vmatpush3.bf16.msra.mxu1 %v5874_v42  ;;  %4558 = vmatpush3.bf16.msra.mxu0 %v5874_v42  ;;  %v712_v62 = vand.u32 4294901760, %v711_v0  ;;  %v719_v42 = vand.u32 4294901760, %v718_v9  ;;  %v4579_v30 = vpack.c.bf16 %v717_v56, %v710_v7  ;;  %v7184_v1 = vand.u32 4294901760, %v6009_v19  ;;  %v3385_v9 = vld [vmem:[%s5743_s17 + $0x30] sm:$0xff]  }
  0xe4   : > { %4464 = vmatprep.subr.bf16.mxu1 %v5915_v59  ;;  %4560 = vmatprep.subr.bf16.mxu0 %v5915_v59  ;;  %v583_v24 = vand.u32 4294901760, %v6044_v31  ;;  %v7187_v56 = vand.u32 4294901760, %v6033_v54  ;;  %v7189_v25 = vand.u32 4294901760, %v5859_v37 }
  0xe5   : > { %v6082_v0 = vsub.f32 %v6009_v19, %v7184_v1  ;;  %v7186_v1 = vand.u32 4294901760, %v6028_v16 }
  0xe6   : > { %v746_v31 = vsub.f32 %v6033_v54, %v7187_v56  ;;  %v4583_v56 = vpack.c.bf16 %v731_v43, %v724_v12  ;;  %v6133_v12 = vunpack.c.h.bf16 %v3385_v9 }
  0xe7   : > { %4466 = vmatpush3.bf16.msra.mxu1 %v5915_v59  ;;  %4562 = vmatpush3.bf16.msra.mxu0 %v5915_v59  ;;  %v6056_v59 = vsub.f32 %v6018_v44, %v6018_v44 }
  0xe8   : > { %4468 = vmatprep.subr.bf16.mxu1 %v5941_v6  ;;  %4564 = vmatprep.subr.bf16.mxu0 %v5941_v6 }
  0xe9   : > { %v7067_v61 = vand.u32 4294901760, %v6056_v59 }
  0xeb   : > { %4470 = vmatpush3.bf16.msra.mxu1 %v5941_v6  ;;  %4566 = vmatpush3.bf16.msra.mxu0 %v5941_v6  ;;  %v4479_v6 = vpack.c.bf16 %v705_v57, %v698_v22  ;;  %v6058_v22 = vunpack.c.h.bf16 %v3383_v4  ;;  %v732_v57 = vsub.f32 %v5998_v48, %v731_v43  ;;  %v7182_v4 = vand.u32 4294901760, %v5845_v33 }
  0xec   : > { %4472 = vmatprep.subr.bf16.mxu1 %v5965_v29  ;;  %4568 = vmatprep.subr.bf16.mxu0 %v5965_v29 }
  0xed   : > { %v6070_v44 = vsub.f32 %v5845_v33, %v7182_v4  ;;  %v7185_v33 = vand.u32 4294901760, %v5852_v35  ;;  %v726_v4 = vand.u32 4294901760, %v725_v18  ;;  %v733_v7 = vand.u32 4294901760, %v732_v57 }
  0xee   : > { %v6102_v18 = vsub.f32 %v6065_v8, %v6065_v8  ;;  %v7191_v57 = vand.u32 4294901760, %v5907_v58  ;;  %v7205_v58 = vand.u32 4294901760, %v6049_v32 }
  0xef   : > { %4474 = vmatpush3.bf16.msra.mxu1 %v5965_v29  ;;  %4570 = vmatpush3.bf16.msra.mxu0 %v5965_v29  ;;  %v6075_v29 = vsub.f32 %v5848_v34, %v7183_v28  ;;  %v6090_v34 = vsub.f32 %v6058_v22, %v6058_v22  ;;  %v6092_v28 = vunpack.c.h.bf16 %v3384_v13  ;;  %v7188_v13 = vand.u32 4294901760, %v5895_v52 }
  0xf0   : > { %4476 = vmatprep.subr.bf16.mxu1 %v4475_v51  ;;  %4572 = vmatprep.subr.bf16.mxu0 %v4571_v55  ;;  %v7206_v52 = vand.u32 4294901760, %v5974_v15  ;;  %v7209_v15 = vand.u32 4294901760, %v6056_v59 }
  0xf1   : > { %v7194_v43 = vand.u32 4294901760, %v6075_v29 }
  0xf2   : > { %3804 = vmatmul.mubr.f32.vlgmr.msra.gmra.mrb[0].mxu1 %v547_v11  ;;  %3972 = vmatmul.mubr.f32.vlgmr.msra.gmra.mrb[0].mxu0 %v7185_v33  ;;  %v739_v11 = vsub.f32 %v6028_v16, %v7186_v1  ;;  %v6108_v33 = vunpack.c.l.bf16 %v3385_v9  ;;  %v601_v1 = vand.u32 4294901760, %v6082_v0  ;;  %v609_v0 = vsub.f32 %v6056_v59, %v7067_v61 }
  0xf3   : > { %4478 = vmatpush3.bf16.msra.mxu1 %v4475_v51  ;;  %4574 = vmatpush3.bf16.msra.mxu0 %v4571_v55  ;;  %v4483_v51 = vpack.c.bf16 %v719_v42, %v712_v62  ;;  %v7068_v55 = vand.u32 4294901760, %v6070_v44  ;;  %v3386_v62 = vld [vmem:[%s5743_s17 + $0x38] sm:$0xff]   ;;  %v760_v9 = vsub.f32 %v6075_v29, %v7194_v43 }
  0xf4   : > { %3806 = vmatprep.mubr.f32.mxu1 %v556_v23  ;;  %3974 = vmatprep.mubr.f32.mxu0 %v7188_v13  ;;  %v6115_v23 = vsub.f32 %v5859_v37, %v7189_v25  ;;  %v7190_v13 = vand.u32 4294901760, %v5879_v45  ;;  %v6131_v37 = vsub.f32 %v6092_v28, %v6092_v28  ;;  %v747_v25 = vand.u32 4294901760, %v746_v31 }
  0xf5   : > { %4480 = vmatprep.subr.bf16.mxu1 %v4479_v6  ;;  %4576 = vmatprep.subr.bf16.mxu0 %v6022_v41  ;;  %v753_v61 = vsub.f32 %v6070_v44, %v7068_v55  ;;  %v7197_v31 = vand.u32 4294901760, %v5890_v50  ;;  %v7199_v55 = vand.u32 4294901760, %v6090_v34 }
  0xf6   : > { %v6120_v42 = vsub.f32 %v5879_v45, %v7190_v13  ;;  %3807 = vmatmul.mubr.f32.gmra.mrb[2].mxu1 %v565_v60  ;;  %3975 = vmatmul.mubr.f32.gmra.mrb[2].mxu0 %v7191_v57  ;;  %7192 = vst [vmem:[#allocation44_spill] sm:$0xff] %v6131_v37  ;;  %v4487_v45 = vpack.c.bf16 %v733_v7, %v726_v4  ;;  %v740_v60 = vand.u32 4294901760, %v739_v11  ;;  %v7193_v13 = vand.u32 4294901760, %v5933_v5 }
  0xf7   : > { %4482 = vmatpush3.bf16.msra.mxu1 %v4479_v6  ;;  %4578 = vmatpush3.bf16.msra.mxu0 %v6022_v41  ;;  %v6147_v6 = vsub.f32 %v6108_v33, %v6108_v33  ;;  %v6149_v41 = vunpack.c.l.bf16 %v3386_v62  ;;  %v7196_v7 = vand.u32 4294901760, %v5887_v49  ;;  %v6161_v43 = vsub.f32 %v5890_v50, %v7197_v31 }
  0xf8   : > { %3809 = vmatprep.mubr.f32.mxu1 %v574_v3  ;;  %3977 = vmatprep.mubr.f32.mxu0 %v7193_v13  ;;  %v773_v4 = vand.u32 4294901760, %v6120_v42  ;;  %v7198_v13 = vand.u32 4294901760, %v5970_v10  ;;  %v618_v3 = vsub.f32 %v6090_v34, %v7199_v55  ;;  %v635_v57 = vand.u32 4294901760, %v6131_v37 }
  0xf9   : > { %7195 = vst [vmem:[#allocation45_spill] sm:$0xff] %v6147_v6  ;;  %4484 = vmatprep.subr.bf16.mxu1 %v4483_v51  ;;  %4580 = vmatprep.subr.bf16.mxu0 %v4579_v30  ;;  %v6156_v11 = vsub.f32 %v5887_v49, %v7196_v7  ;;  %v6171_v5 = vsub.f32 %v6133_v12, %v6133_v12  ;;  %v6173_v49 = vunpack.c.h.bf16 %v3386_v62  ;;  %v610_v50 = vand.u32 4294901760, %v609_v0 }
  0xfa   : > { %3810 = vmatmul.mubr.f32.gmra.mrb[4].mxu1 %v583_v24  ;;  %3978 = vmatmul.mubr.f32.gmra.mrb[4].mxu0 %v7198_v13  ;;  %v4491_v7 = vpack.c.bf16 %v747_v25, %v740_v60  ;;  %v7202_v24 = vand.u32 4294901760, %v6028_v16  ;;  %v7203_v31 = vand.u32 4294901760, %v6033_v54  ;;  %v7204_v10 = vand.u32 4294901760, %v6102_v18 }
  0xfb   : > { %7200 = vst [vmem:[#allocation46_spill] sm:$0xff] %v6171_v5  ;;  %7201 = vst [vmem:[#allocation47_spill] sm:$0xff] %v6173_v49  ;;  %4486 = vmatpush3.bf16.msra.mxu1 %v4483_v51  ;;  %4582 = vmatpush3.bf16.msra.mxu0 %v4579_v30  ;;  %v754_v62 = vand.u32 4294901760, %v753_v61  ;;  %v761_v51 = vand.u32 4294901760, %v760_v9  ;;  %v644_v30 = vand.u32 4294901760, %v6147_v6  ;;  %v6189_v0 = vsub.f32 %v6149_v41, %v6149_v41 }
  0xfc   : > { %v4587_v13 = vpack.c.bf16 %v7203_v31, %v7202_v24  ;;  %v627_v55 = vsub.f32 %v6102_v18, %v7204_v10  ;;  %3812 = vmatprep.mubr.f32.mxu1 %v7205_v58  ;;  %3980 = vmatprep.mubr.f32.mxu0 %v7206_v52  ;;  %v7207_v60 = vand.u32 4294901760, %v6115_v23  ;;  %v774_v32 = vsub.f32 %v6120_v42, %v773_v4 }
  0xfd   : > { %4488 = vmatprep.subr.bf16.mxu1 %v4487_v45  ;;  %4584 = vmatprep.subr.bf16.mxu0 %v4583_v56  ;;  %v780_v58 = vand.u32 4294901760, %v6156_v11  ;;  %v787_v52 = vand.u32 4294901760, %v6161_v43  ;;  %v7208_v61 = vand.u32 4294901760, %v6009_v19  ;;  %v619_v25 = vand.u32 4294901760, %v618_v3 }
  0xfe   : > { %v767_v10 = vsub.f32 %v6115_v23, %v7207_v60  ;;  %3813 = vmatmul.mubr.f32.gmra.mrb[6].mxu1 %v601_v1  ;;  %v636_v9 = vsub.f32 %v6131_v37, %v635_v57  ;;  %v653_v24 = vand.u32 4294901760, %v6171_v5  ;;  %v6203_v31 = vsub.f32 %v6173_v49, %v6173_v49 }
  0xff   : > { %3981 = vmatmul.mubr.f32.gmra.mrb[6].mxu0 %v7208_v61  ;;  %4490 = vmatpush3.bf16.msra.mxu1 %v4487_v45  ;;  %v628_v60 = vand.u32 4294901760, %v627_v55  ;;  %v4495_v1 = vpack.c.bf16 %v761_v51, %v754_v62  ;;  %v7210_v19 = vand.u32 4294901760, %v6070_v44  ;;  %v7211_v3 = vand.u32 4294901760, %v6075_v29 }
 0x100   : > { %4586 = vmatpush3.bf16.msra.mxu0 %v4583_v56  ;;  %3815 = vmatprep.mubr.f32.mxu1 %v610_v50  ;;  %v645_v37 = vsub.f32 %v6147_v6, %v644_v30  ;;  %v662_v35 = vand.u32 4294901760, %v6189_v0  ;;  %v768_v49 = vand.u32 4294901760, %v767_v10  ;;  %v775_v45 = vand.u32 4294901760, %v774_v32 }
 0x101   : > { %3983 = vmatprep.mubr.f32.mxu0 %v7209_v15  ;;  %v4591_v61 = vpack.c.bf16 %v7211_v3, %v7210_v19  ;;  %4492 = vmatprep.subr.bf16.mxu1 %v4491_v7  ;;  %v781_v56 = vsub.f32 %v6156_v11, %v780_v58  ;;  %v788_v50 = vsub.f32 %v6161_v43, %v787_v52  ;;  %v7212_v15 = vand.u32 4294901760, %v6090_v34 }
 0x102   : > { %4588 = vmatprep.subr.bf16.mxu0 %v4587_v13  ;;  %3816 = vmatmul.mubr.f32.gmra.mrb[8].mxu1 %v619_v25  ;;  %v637_v55 = vand.u32 4294901760, %v636_v9  ;;  %v654_v62 = vsub.f32 %v6171_v5, %v653_v24  ;;  %v671_v19 = vand.u32 4294901760, %v6203_v31  ;;  %v7213_v51 = vand.u32 4294901760, %v6102_v18 }
 0x103   : > { %3984 = vmatmul.mubr.f32.gmra.mrb[8].mxu0 %v7212_v15  ;;  %4494 = vmatpush3.bf16.msra.mxu1 %v4491_v7  ;;  %v646_v10 = vand.u32 4294901760, %v645_v37  ;;  %v663_v32 = vsub.f32 %v6189_v0, %v662_v35  ;;  %v4499_v25 = vpack.c.bf16 %v775_v45, %v768_v49  ;;  %v7214_v3 = vand.u32 4294901760, %v6115_v23 }
 0x104   : > { %4590 = vmatpush3.bf16.msra.mxu0 %v4587_v13  ;;  %3818 = vmatprep.mubr.f32.mxu1 %v628_v60  ;;  %v782_v9 = vand.u32 4294901760, %v781_v56  ;;  %v789_v6 = vand.u32 4294901760, %v788_v50  ;;  %v655_v5 = vand.u32 4294901760, %v654_v62  ;;  %v672_v7 = vsub.f32 %v6203_v31, %v671_v19  ;;  %v411_v62 = vld [vmem:[#allocation2 + $0x28] sm:$0xff] }
 0x105   : > { %3986 = vmatprep.mubr.f32.mxu0 %v7213_v51  ;;  %4496 = vmatprep.subr.bf16.mxu1 %v4495_v1  ;;  %v4595_v15 = vpack.c.bf16 %v773_v4, %v7214_v3  ;;  %v664_v37 = vand.u32 4294901760, %v663_v32  ;;  %v4599_v60 = vpack.c.bf16 %v787_v52, %v780_v58  ;;  %v7228_v4 = vld [vmem:[#allocation32_spill] sm:$0xff]  ;;  %v410_v32 = vld [vmem:[#allocation2 + $0x20] sm:$0xff] }
 0x106   : > { %4592 = vmatprep.subr.bf16.mxu0 %v4591_v61  ;;  %3819 = vmatmul.mubr.f32.gmra.mrb[10].mxu1 %v637_v55  ;;  %v4503_v13 = vpack.c.bf16 %v789_v6, %v782_v9  ;;  %v673_v49 = vand.u32 4294901760, %v672_v7  ;;  %v7227_v6 = vld [vmem:[#allocation31_spill] sm:$0xff] }
 0x107   : > { %3987 = vmatmul.mubr.f32.gmra.mrb[10].mxu0 %v635_v57  ;;  %4498 = vmatpush3.bf16.msra.mxu1 %v4495_v1  ;;  %v4507_v57 = vpack.c.bf16 %v5863_v39, %v5861_v38  ;;  %v7215_v38 = vld [vmem:[#allocation34_spill] sm:$0xff]  ;;  %v7216_v39 = vld [vmem:[#allocation35_spill] sm:$0xff] }
 0x108   : > { %4594 = vmatpush3.bf16.msra.mxu0 %v4591_v61  ;;  %3821 = vmatprep.mubr.f32.mxu1 %v646_v10  ;;  %v408_v61 = vld [vmem:[#allocation2 + $0x10] sm:$0xff] }
 0x109   : > { %3989 = vmatprep.mubr.f32.mxu0 %v644_v30  ;;  %4500 = vmatprep.subr.bf16.mxu1 %v4499_v25 }
 0x10a   : > { %4596 = vmatprep.subr.bf16.mxu0 %v4595_v15  ;;  %3822 = vmatmul.mubr.f32.gmra.mrb[12].mxu1 %v655_v5  ;;  %v4511_v5 = vpack.c.bf16 %v5883_v47, %v5881_v46  ;;  %v4523_v46 = vpack.c.bf16 %v6033_v54, %v6028_v16  ;;  %v7218_v47 = vld [vmem:[#allocation38_spill] sm:$0xff]  ;;  %v7223_v54 = vld [vmem:[#allocation39_spill] sm:$0xff] }
 0x10b   : > { %3990 = vmatmul.mubr.f32.gmra.mrb[12].mxu0 %v653_v24  ;;  %4502 = vmatpush3.bf16.msra.mxu1 %v4499_v25  ;;  %v7224_v16 = vld [vmem:[#allocation47_spill] sm:$0xff] }
 0x10c   : > { %4598 = vmatpush3.bf16.msra.mxu0 %v4595_v15  ;;  %3824 = vmatprep.mubr.f32.mxu1 %v664_v37  ;;  %v413_v37 = vld [vmem:[#allocation2 + $0x38] sm:$0xff] }
 0x10d   : > { %3992 = vmatprep.mubr.f32.mxu0 %v662_v35  ;;  %4504 = vmatprep.subr.bf16.mxu1 %v4503_v13  ;;  %v4515_v35 = vpack.c.bf16 %v5957_v26, %v5952_v20  ;;  %v7221_v20 = vld [vmem:[#allocation33_spill] sm:$0xff]  ;;  %v4531_v26 = vpack.c.bf16 %v6120_v42, %v6115_v23  ;;  %v7225_v23 = vld [vmem:[#allocation27_spill] sm:$0xff] }
 0x10e   : > { %4600 = vmatprep.subr.bf16.mxu0 %v4599_v60  ;;  %3825 = vmatmul.mubr.f32.gmra.mrb[14].mxu1 %v673_v49  ;;  %v7226_v42 = vld [vmem:[#allocation29_spill] sm:$0xff] }
 0x10f   : > { %3993 = vmatmul.mubr.f32.gmra.mrb[14].mxu0 %v671_v19  ;;  %4506 = vmatpush3.bf16.msra.mxu1 %v4503_v13 }
 0x110   : > { %4602 = vmatpush3.bf16.msra.mxu0 %v4599_v60  ;;  %3859 = vmatprep.mubr.f32.mxu1 %v5777_v2 }
 0x111   : > { %4027 = vmatprep.mubr.f32.mxu0 %v5777_v2  ;;  %4508 = vmatprep.subr.bf16.mxu1 %v4507_v57 }
 0x112   : > { %4604 = vmatprep.subr.bf16.mxu0 %v5795_v14  ;;  %3860 = vmatmul.mubr.f32.vlgmr.msra.gmra.mrb[0].mxu1 %v5829_v27 }
 0x113   : > { %4028 = vmatmul.mubr.f32.vlgmr.msra.gmra.mrb[0].mxu0 %v5829_v27  ;;  %4510 = vmatpush3.bf16.msra.mxu1 %v4507_v57  ;;  %v412_v57 = vld [vmem:[#allocation2 + $0x30] sm:$0xff] }
 0x114   : > { %4606 = vmatpush3.bf16.msra.mxu0 %v5795_v14  ;;  %3862 = vmatprep.mubr.f32.mxu1 %v5854_v36  ;;  %v4519_v14 = vpack.c.bf16 %v5998_v48, %v5986_v63  ;;  %v7219_v48 = vld [vmem:[#allocation43_spill] sm:$0xff]  ;;  %v4527_v63 = vpack.c.bf16 %v6075_v29, %v6070_v44  ;;  %v7222_v44 = vld [vmem:[#allocation37_spill] sm:$0xff]  ;;  %v4535_v29 = vpack.c.bf16 %v6161_v43, %v6156_v11  ;;  %v7229_v11 = vld [vmem:[#allocation36_spill] sm:$0xff] }
 0x115   : > { %4030 = vmatprep.mubr.f32.mxu0 %v5854_v36  ;;  %4512 = vmatprep.subr.bf16.mxu1 %v4511_v5  ;;  %v7230_v43 = vld [vmem:[#allocation40_spill] sm:$0xff] }
 0x116   : > { %4608 = vmatprep.subr.bf16.mxu0 %v5799_v17  ;;  %3863 = vmatmul.mubr.f32.gmra.mrb[2].mxu1 %v5865_v40 }
 0x117   : > { %4031 = vmatmul.mubr.f32.gmra.mrb[2].mxu0 %v5865_v40  ;;  %4514 = vmatpush3.bf16.msra.mxu1 %v4511_v5 }
 0x118   : > { %4610 = vmatpush3.bf16.msra.mxu0 %v5799_v17  ;;  %3865 = vmatprep.mubr.f32.mxu1 %v5897_v53  ;;  %v7217_v17 = vld [vmem:[#allocation28_spill] sm:$0xff] }
 0x119   : > { %4033 = vmatprep.mubr.f32.mxu0 %v5897_v53  ;;  %4516 = vmatprep.subr.bf16.mxu1 %v4515_v35 }
 0x11a   : > { %4612 = vmatprep.subr.bf16.mxu0 %v5818_v21  ;;  %3866 = vmatmul.mubr.f32.gmra.mrb[4].mxu1 %v7215_v38 }
 0x11b   : > { %4034 = vmatmul.mubr.f32.gmra.mrb[4].mxu0 %v7215_v38  ;;  %4518 = vmatpush3.bf16.msra.mxu1 %v4515_v35 }
 0x11c   : > { %4614 = vmatpush3.bf16.msra.mxu0 %v5818_v21  ;;  %3868 = vmatprep.mubr.f32.mxu1 %v7216_v39  ;;  %v7220_v21 = vld [vmem:[#allocation30_spill] sm:$0xff] }
 0x11d   : > { %4036 = vmatprep.mubr.f32.mxu0 %v7216_v39  ;;  %4520 = vmatprep.subr.bf16.mxu1 %v4519_v14 }
 0x11e   : > { %4616 = vmatprep.subr.bf16.mxu0 %v7217_v17  ;;  %3869 = vmatmul.mubr.f32.gmra.mrb[6].mxu1 %v7218_v47 }
 0x11f   : > { %4037 = vmatmul.mubr.f32.gmra.mrb[6].mxu0 %v7218_v47  ;;  %4522 = vmatpush3.bf16.msra.mxu1 %v4519_v14 }
 0x120   : > { %4618 = vmatpush3.bf16.msra.mxu0 %v7217_v17  ;;  %3871 = vmatprep.mubr.f32.mxu1 %v7219_v48  ;;  %v415_v17 = vld [vmem:[#allocation2 + $0x48] sm:$0xff] }
 0x121   : > { %4039 = vmatprep.mubr.f32.mxu0 %v7219_v48  ;;  %4524 = vmatprep.subr.bf16.mxu1 %v4523_v46 }
 0x122   : > { %4620 = vmatprep.subr.bf16.mxu0 %v7220_v21  ;;  %3872 = vmatmul.mubr.f32.gmra.mrb[8].mxu1 %v6058_v22 }
 0x123   : > { %4040 = vmatmul.mubr.f32.gmra.mrb[8].mxu0 %v6058_v22  ;;  %4526 = vmatpush3.bf16.msra.mxu1 %v4523_v46 }
 0x124   : > { %4622 = vmatpush3.bf16.msra.mxu0 %v7220_v21  ;;  %3874 = vmatprep.mubr.f32.mxu1 %v6065_v8  ;;  %v414_v21 = vld [vmem:[#allocation2 + $0x40] sm:$0xff] }
 0x125   : > { %4042 = vmatprep.mubr.f32.mxu0 %v6065_v8  ;;  %4528 = vmatprep.subr.bf16.mxu1 %v4527_v63 }
 0x126   : > { %4624 = vmatprep.subr.bf16.mxu0 %v7221_v20  ;;  %3875 = vmatmul.mubr.f32.gmra.mrb[10].mxu1 %v6092_v28 }
 0x127   : > { %4043 = vmatmul.mubr.f32.gmra.mrb[10].mxu0 %v6092_v28  ;;  %4530 = vmatpush3.bf16.msra.mxu1 %v4527_v63 }
 0x128   : > { %4626 = vmatpush3.bf16.msra.mxu0 %v7221_v20  ;;  %3877 = vmatprep.mubr.f32.mxu1 %v6108_v33 }
 0x129   : > { %4045 = vmatprep.mubr.f32.mxu0 %v6108_v33  ;;  %4532 = vmatprep.subr.bf16.mxu1 %v4531_v26 }
 0x12a   : > { %4628 = vmatprep.subr.bf16.mxu0 %v7222_v44  ;;  %3878 = vmatmul.mubr.f32.gmra.mrb[12].mxu1 %v6133_v12 }
 0x12b   : > { %4046 = vmatmul.mubr.f32.gmra.mrb[12].mxu0 %v6133_v12  ;;  %4534 = vmatpush3.bf16.msra.mxu1 %v4531_v26 }
 0x12c   : > { %4630 = vmatpush3.bf16.msra.mxu0 %v7222_v44  ;;  %3880 = vmatprep.mubr.f32.mxu1 %v6149_v41 }
 0x12d   : > { %4048 = vmatprep.mubr.f32.mxu0 %v6149_v41  ;;  %4536 = vmatprep.subr.bf16.mxu1 %v4535_v29 }
 0x12e   : > { %4632 = vmatprep.subr.bf16.mxu0 %v7223_v54  ;;  %3881 = vmatmul.mubr.f32.gmra.mrb[14].mxu1 %v7224_v16 }
 0x12f   : > { %4049 = vmatmul.mubr.f32.gmra.mrb[14].mxu0 %v7224_v16  ;;  %4538 = vmatpush3.bf16.msra.mxu1 %v4535_v29 }
 0x130   : > { %4634 = vmatpush3.bf16.msra.mxu0 %v7223_v54  ;;  %3915 = vmatprep.mubr.f32.mxu1 %v7225_v23  ;;  %v417_v54 = vld [vmem:[#allocation2 + $0x58] sm:$0xff] }
 0x131   : > { %4083 = vmatprep.mubr.f32.mxu0 %v5777_v2  ;;  %v7231_v2 = vld [vmem:[#allocation41_spill] sm:$0xff] }
 0x132   : > { %3916 = vmatmul.mubr.f32.vlgmr.msra.gmra.mrb[0].mxu1 %v7226_v42 }
 0x133   : > { %4084 = vmatmul.mubr.f32.vlgmr.msra.gmra.mrb[0].mxu0 %v5829_v27  ;;  %3918 = vmatprep.mubr.f32.mxu1 %v7227_v6  ;;  %v7232_v27 = vld [vmem:[#allocation42_spill] sm:$0xff]  ;;  %v416_v6 = vld [vmem:[#allocation2 + $0x50] sm:$0xff] }
 0x134   : > { %4086 = vmatprep.mubr.f32.mxu0 %v5854_v36  ;;  %v7233_v36 = vld [vmem:[#allocation44_spill] sm:$0xff] }
 0x136   : > { %3919 = vmatmul.mubr.f32.gmra.mrb[2].mxu1 %v7228_v4 }
 0x137   : > { %4087 = vmatmul.mubr.f32.gmra.mrb[2].mxu0 %v5865_v40  ;;  %3921 = vmatprep.mubr.f32.mxu1 %v7229_v11  ;;  %v7234_v40 = vld [vmem:[#allocation45_spill] sm:$0xff] }
 0x138   : > { %4089 = vmatprep.mubr.f32.mxu0 %v5897_v53  ;;  %v7235_v53 = vld [vmem:[#allocation46_spill] sm:$0xff] }
 0x13a   : > { %3922 = vmatmul.mubr.f32.gmra.mrb[4].mxu1 %v7230_v43 }
 0x13b   : > { %4090 = vmatmul.mubr.f32.gmra.mrb[4].mxu0 %v7215_v38  ;;  %3924 = vmatprep.mubr.f32.mxu1 %v7231_v2 }
 0x13c   : > { %4092 = vmatprep.mubr.f32.mxu0 %v7216_v39 }
 0x13e   : > { %3925 = vmatmul.mubr.f32.gmra.mrb[6].mxu1 %v7232_v27 }
 0x13f   : > { %4093 = vmatmul.mubr.f32.gmra.mrb[6].mxu0 %v7218_v47  ;;  %3927 = vmatprep.mubr.f32.mxu1 %v6056_v59 }
 0x140   : > { %4095 = vmatprep.mubr.f32.mxu0 %v7219_v48 }
 0x142   : > { %3928 = vmatmul.mubr.f32.gmra.mrb[8].mxu1 %v6090_v34 }
 0x143   : > { %4096 = vmatmul.mubr.f32.gmra.mrb[8].mxu0 %v6058_v22  ;;  %3930 = vmatprep.mubr.f32.mxu1 %v6102_v18  ;;  %v407_v22 = vld [vmem:[#allocation2 + $0x8] sm:$0xff]  ;;  %v406_v18 = vld [vmem:[#allocation2] sm:$0xff] }
 0x144   : > { %4098 = vmatprep.mubr.f32.mxu0 %v6065_v8 }
 0x146   : > { %3931 = vmatmul.mubr.f32.gmra.mrb[10].mxu1 %v7233_v36  ;;  %v419_v36 = vld [vmem:[#allocation2 + $0x68] sm:$0xff] }
 0x147   : > { %4099 = vmatmul.mubr.f32.gmra.mrb[10].mxu0 %v6092_v28  ;;  %3933 = vmatprep.mubr.f32.mxu1 %v7234_v40 }
 0x148   : > { %4101 = vmatprep.mubr.f32.mxu0 %v6108_v33 }
 0x14a   : > { %3934 = vmatmul.mubr.f32.gmra.mrb[12].mxu1 %v7235_v53 }
 0x14b   : > { %4102 = vmatmul.mubr.f32.gmra.mrb[12].mxu0 %v6133_v12  ;;  %3936 = vmatprep.mubr.f32.mxu1 %v6189_v0  ;;  %v409_v12 = vld [vmem:[#allocation2 + $0x18] sm:$0xff] }
 0x14c   : > { %4104 = vmatprep.mubr.f32.mxu0 %v6149_v41 }
 0x14e   : > { %3937 = vmatmul.mubr.f32.gmra.mrb[14].mxu1 %v6203_v31 }
 0x14f   : > { %4105 = vmatmul.mubr.f32.gmra.mrb[14].mxu0 %v7224_v16 }
 0x205   : > { %v3917_v59 = vpop.f32.mrb[0].mxu1 }
 0x206   : > { %v4085_v8 = vpop.f32.mrb[0].mxu0  ;;  %v1003_v28 = vpop.f32.mrb[1].mxu1 }
 0x207   : > { %v4827_v34 = vadd.f32 %v4085_v8, %v3917_v59  ;;  %v1565_v30 = vpop.f32.mrb[1].mxu0 }
 0x208   : > { %v4828_v33 = vadd.f32 %v1565_v30, %v1003_v28 }
 0x209   : > { %v1645_v58 = vadd.f32 %v4827_v34, %v407_v22  ;;  %v3920_v24 = vpop.f32.mrb[2].mxu1  ;;  %v418_v22 = vld [vmem:[#allocation2 + $0x60] sm:$0xff] }
 0x20a   : > { %v1644_v52 = vadd.f32 %v4828_v33, %v406_v18  ;;  %v4088_v1 = vpop.f32.mrb[2].mxu0  ;;  %v1015_v41 = vpop.f32.mrb[3].mxu1  ;;  %v421_v33 = vld [vmem:[#allocation2 + $0x78] sm:$0xff] }
 0x20b   : > { %1661 = vst [vmem:[#allocation2 + $0x8] sm:$0xff] %v1645_v58  ;;  %v4829_v0 = vadd.f32 %v4088_v1, %v3920_v24  ;;  %v1575_v31 = vpop.f32.mrb[3].mxu0 }
 0x20c   : > { %1660 = vst [vmem:[#allocation2] sm:$0xff] %v1644_v52  ;;  %v4830_v45 = vadd.f32 %v1575_v31, %v1015_v41 }
 0x20d   : > { %v1647_v56 = vadd.f32 %v4829_v0, %v409_v12  ;;  %v3923_v55 = vpop.f32.mrb[4].mxu1  ;;  %v420_v12 = vld [vmem:[#allocation2 + $0x70] sm:$0xff] }
 0x20e   : > { %v1646_v50 = vadd.f32 %v4830_v45, %v408_v61  ;;  %v4091_v19 = vpop.f32.mrb[4].mxu0  ;;  %v1027_v10 = vpop.f32.mrb[5].mxu1 }
 0x20f   : > { %1663 = vst [vmem:[#allocation2 + $0x18] sm:$0xff] %v1647_v56  ;;  %v4831_v51 = vadd.f32 %v4091_v19, %v3923_v55  ;;  %v1585_v25 = vpop.f32.mrb[5].mxu0 }
 0x210   : > { %1662 = vst [vmem:[#allocation2 + $0x10] sm:$0xff] %v1646_v50  ;;  %v4832_v3 = vadd.f32 %v1585_v25, %v1027_v10 }
 0x211   : > { %v1649_v15 = vadd.f32 %v4831_v51, %v411_v62  ;;  %v3926_v7 = vpop.f32.mrb[6].mxu1 }
 0x212   : > { %v1648_v9 = vadd.f32 %v4832_v3, %v410_v32  ;;  %v4094_v13 = vpop.f32.mrb[6].mxu0  ;;  %v1039_v49 = vpop.f32.mrb[7].mxu1 }
 0x213   : > { %1665 = vst [vmem:[#allocation2 + $0x28] sm:$0xff] %v1649_v15  ;;  %v4833_v60 = vadd.f32 %v4094_v13, %v3926_v7  ;;  %v1595_v5 = vpop.f32.mrb[7].mxu0 }
 0x214   : > { %1664 = vst [vmem:[#allocation2 + $0x20] sm:$0xff] %v1648_v9  ;;  %v4834_v35 = vadd.f32 %v1595_v5, %v1039_v49 }
 0x215   : > { %v1651_v14 = vadd.f32 %v4833_v60, %v413_v37  ;;  %v3929_v39 = vpop.f32.mrb[8].mxu1 }
 0x216   : > { %v1650_v38 = vadd.f32 %v4834_v35, %v412_v57  ;;  %v4097_v46 = vpop.f32.mrb[8].mxu0  ;;  %v1051_v48 = vpop.f32.mrb[9].mxu1 }
 0x217   : > { %1667 = vst [vmem:[#allocation2 + $0x38] sm:$0xff] %v1651_v14  ;;  %v4835_v47 = vadd.f32 %v4097_v46, %v3929_v39  ;;  %v1605_v63 = vpop.f32.mrb[9].mxu0 }
 0x218   : > { %1666 = vst [vmem:[#allocation2 + $0x30] sm:$0xff] %v1650_v38  ;;  %v4836_v20 = vadd.f32 %v1605_v63, %v1051_v48 }
 0x219   : > { %v1653_v26 = vadd.f32 %v4835_v47, %v415_v17  ;;  %v3932_v29 = vpop.f32.mrb[10].mxu1 }
 0x21a   : > { %v1652_v44 = vadd.f32 %v4836_v20, %v414_v21  ;;  %v4100_v16 = vpop.f32.mrb[10].mxu0  ;;  %v1063_v42 = vpop.f32.mrb[11].mxu1 }
 0x21b   : > { %1669 = vst [vmem:[#allocation2 + $0x48] sm:$0xff] %v1653_v26  ;;  %v4837_v23 = vadd.f32 %v4100_v16, %v3932_v29  ;;  %v1615_v4 = vpop.f32.mrb[11].mxu0 }
 0x21c   : > { %1668 = vst [vmem:[#allocation2 + $0x40] sm:$0xff] %v1652_v44  ;;  %v4838_v11 = vadd.f32 %v1615_v4, %v1063_v42 }
 0x21d   : > { %v1655_v43 = vadd.f32 %v4837_v23, %v417_v54  ;;  %v3935_v27 = vpop.f32.mrb[12].mxu1 }
 0x21e   : > { %v1654_v2 = vadd.f32 %v4838_v11, %v416_v6  ;;  %v4103_v40 = vpop.f32.mrb[12].mxu0  ;;  %v1075_v59 = vpop.f32.mrb[13].mxu1 }
 0x21f   : > { %1671 = vst [vmem:[#allocation2 + $0x58] sm:$0xff] %v1655_v43  ;;  %v4839_v53 = vadd.f32 %v4103_v40, %v3935_v27  ;;  %v1625_v8 = vpop.f32.mrb[13].mxu0 }
 0x220   : > { %1670 = vst [vmem:[#allocation2 + $0x50] sm:$0xff] %v1654_v2  ;;  %v4840_v34 = vadd.f32 %v1625_v8, %v1075_v59 }
 0x221   : > { %v1657_v28 = vadd.f32 %v4839_v53, %v419_v36  ;;  %v3938_v30 = vpop.f32.mrb[14].mxu1 }
 0x222   : > { %v1656_v18 = vadd.f32 %v4840_v34, %v418_v22  ;;  %v4106_v58 = vpop.f32.mrb[14].mxu0  ;;  %v1087_v24 = vpop.f32.mrb[15].mxu1  ;;  %1679 = sbr.rel (%p3337_p7) target bundleno = 921 (0x399), region = 64 }
 0x223   : > { %1673 = vst [vmem:[#allocation2 + $0x68] sm:$0xff] %v1657_v28  ;;  %v4841_v52 = vadd.f32 %v4106_v58, %v3938_v30  ;;  %v1635_v1 = vpop.f32.mrb[15].mxu0 }
 0x224   : > { %1672 = vst [vmem:[#allocation2 + $0x60] sm:$0xff] %v1656_v18  ;;  %v4842_v0 = vadd.f32 %v1635_v1, %v1087_v24 }
 0x225   : > { %v1659_v41 = vadd.f32 %v4841_v52, %v421_v33 }
 0x226   : > { %v1658_v61 = vadd.f32 %v4842_v0, %v420_v12 }
 0x227   : > { %1675 = vst [vmem:[#allocation2 + $0x78] sm:$0xff] %v1659_v41 }
 0x228   : > { %1674 = vst [vmem:[#allocation2 + $0x70] sm:$0xff] %v1658_v61 }
 0x229   : > { %v1746_v31 = vld [vmem:[#allocation10] sm:$0xff]  ;;  %v1747_v45 = vld [vmem:[#allocation10 + $0x8] sm:$0xff]  ;;  %v1748_v56 = vld [vmem:[#allocation10 + $0x10] sm:$0xff]  ;;  %s1680_s22 = sadd.f32 1.0, %s5768_s1 }
 0x22a   : > { %v1763_v50 = vand.u32 4294901760, %v1746_v31  ;;  %v1766_v55 = vand.u32 4294901760, %v1747_v45  ;;  %v6323_v62 = vld [vmem:[#allocation10 + $0x18] sm:$0xff]  ;;  %v1769_v19 = vand.u32 4294901760, %v1748_v56  ;;  %v6325_v51 = vld [vmem:[#allocation10 + $0x20] sm:$0xff]  ;;  %v6327_v10 = vld [vmem:[#allocation10 + $0x28] sm:$0xff] }
 0x22b   : > { %v1772_v32 = vand.u32 4294901760, %v6323_v62  ;;  %v1775_v25 = vand.u32 4294901760, %v6325_v51  ;;  %v1778_v3 = vand.u32 4294901760, %v6327_v10  ;;  %v6332_v15 = vld [vmem:[#allocation10 + $0x30] sm:$0xff]  ;;  %v6334_v9 = vld [vmem:[#allocation10 + $0x38] sm:$0xff]  ;;  %v6336_v7 = vld [vmem:[#allocation10 + $0x40] sm:$0xff]  ;;  %v6346_v5 = vstv %s1680_s22 }
 0x22c   : > { %v6338_v37 = vpack.c.bf16 %v1766_v55, %v1763_v50  ;;  %v1781_v13 = vand.u32 4294901760, %v6332_v15  ;;  %v1784_v60 = vand.u32 4294901760, %v6334_v9  ;;  %v6342_v49 = vld [vmem:[#allocation10 + $0x48] sm:$0xff]  ;;  %v6344_v57 = vld [vmem:[#allocation10 + $0x50] sm:$0xff]  ;;  %v6350_v14 = vld [vmem:[#allocation10 + $0x58] sm:$0xff]  ;;  %v7091_v39 = vand.u32 4294901760, %v6336_v7 }
 0x22d   : > { %v6348_v35 = vpack.c.bf16 %v1772_v32, %v1769_v19  ;;  %v6352_v38 = vld [vmem:[#allocation10 + $0x60] sm:$0xff]  ;;  %v6357_v17 = vld [vmem:[#allocation10 + $0x68] sm:$0xff]  ;;  %v6366_v48 = vpack.c.bf16 %v1778_v3, %v1775_v25  ;;  %v7090_v21 = vand.u32 4294901760, %v6342_v49  ;;  %v7086_v63 = vand.u32 4294901760, %v6344_v57  ;;  %v1683_v29 = vld [vmem:[%s5757_s0 + $0x10] sm:$0xff] }
 0x22e   : > { %4636 = vmatprep.subr.bf16.mxu1 %v6338_v37  ;;  %4732 = vmatprep.subr.bf16.mxu0 %v6338_v37  ;;  %v1681_v46 = vld [vmem:[%s5757_s0] sm:$0xff]  ;;  %v1682_v26 = vld [vmem:[%s5757_s0 + $0x8] sm:$0xff]  ;;  %v6379_v54 = vpack.c.bf16 %v1784_v60, %v1781_v13  ;;  %v7085_v16 = vand.u32 4294901760, %v6350_v14  ;;  %v7084_v23 = vand.u32 4294901760, %v6352_v38  ;;  %v6383_v42 = vld [vmem:[#allocation10 + $0x70] sm:$0xff]  ;;  %v7083_v11 = vand.u32 4294901760, %v6357_v17 }
 0x22f   : > { %v1714_v47 = vld [vmem:[#allocation2] sm:$0xff]  ;;  %4638 = vmatpush3.bf16.msra.mxu1 %v6338_v37  ;;  %4734 = vmatpush3.bf16.msra.mxu0 %v6338_v37  ;;  %7236 = vst [vmem:[#allocation48_spill] sm:$0xff] %v6366_v48  ;;  %v1698_v20 = vmul.f32 %v6346_v5, %v1681_v46  ;;  %v1715_v44 = vld [vmem:[#allocation2 + $0x8] sm:$0xff]  ;;  %v1699_v6 = vmul.f32 %v6346_v5, %v1682_v26  ;;  %v1684_v4 = vld [vmem:[%s5757_s0 + $0x18] sm:$0xff]  ;;  %v7082_v28 = vand.u32 4294901760, %v6383_v42 }
 0x230   : > { %4640 = vmatprep.subr.bf16.mxu1 %v6348_v35  ;;  %4736 = vmatprep.subr.bf16.mxu0 %v6348_v35  ;;  %7237 = vst [vmem:[#allocation49_spill] sm:$0xff] %v6379_v54  ;;  %v6388_v2 = vsub.f32 %v1746_v31, %v1763_v50  ;;  %v6390_v27 = vsub.f32 %v1747_v45, %v1766_v55  ;;  %v1716_v36 = vld [vmem:[#allocation2 + $0x10] sm:$0xff]  ;;  %v1717_v40 = vld [vmem:[#allocation2 + $0x18] sm:$0xff] }
 0x231   : > { %v1730_v43 = vadd.f32 %v1714_v47, %v1698_v20  ;;  %v6392_v53 = vld [vmem:[#allocation10 + $0x78] sm:$0xff]  ;;  %v1731_v59 = vadd.f32 %v1715_v44, %v1699_v6  ;;  %v1700_v22 = vmul.f32 %v6346_v5, %v1683_v29  ;;  %v1701_v8 = vmul.f32 %v6346_v5, %v1684_v4  ;;  %v1686_v44 = vld [vmem:[%s5757_s0 + $0x28] sm:$0xff] }
 0x232   : > { %v6396_v34 = vsub.f32 %v1748_v56, %v1769_v19  ;;  %v2006_v30 = vand.u32 4294901760, %v6388_v2  ;;  %v2013_v33 = vand.u32 4294901760, %v6390_v27  ;;  %v6410_v12 = vsub.f32 %v6323_v62, %v1772_v32  ;;  %v1685_v32 = vld [vmem:[%s5757_s0 + $0x20] sm:$0xff] }
 0x233   : > { %4642 = vmatpush3.bf16.msra.mxu1 %v6348_v35  ;;  %4738 = vmatpush3.bf16.msra.mxu0 %v6348_v35  ;;  %v6401_v18 = vand.u32 4294901760, %v1730_v43  ;;  %v6407_v58 = vand.u32 4294901760, %v1731_v59  ;;  %v1732_v52 = vadd.f32 %v1716_v36, %v1700_v22  ;;  %v1733_v24 = vadd.f32 %v1717_v40, %v1701_v8  ;;  %v1718_v36 = vld [vmem:[#allocation2 + $0x20] sm:$0xff] }
 0x234   : > { %4644 = vmatprep.subr.bf16.mxu1 %v6366_v48  ;;  %4740 = vmatprep.subr.bf16.mxu0 %v6366_v48  ;;  %v7081_v1 = vand.u32 4294901760, %v6392_v53  ;;  %v2007_v41 = vsub.f32 %v6388_v2, %v2006_v30  ;;  %v2014_v61 = vsub.f32 %v6390_v27, %v2013_v33  ;;  %v2020_v50 = vand.u32 4294901760, %v6396_v34 }
 0x235   : > { %v6414_v0 = vsub.f32 %v1730_v43, %v6401_v18  ;;  %v6419_v31 = vsub.f32 %v1731_v59, %v6407_v58  ;;  %v6421_v45 = vand.u32 4294901760, %v1732_v52  ;;  %v6423_v56 = vand.u32 4294901760, %v1733_v24 }
 0x236   : > { %v2008_v62 = vand.u32 4294901760, %v2007_v41  ;;  %v2015_v19 = vand.u32 4294901760, %v2014_v61  ;;  %v6436_v46 = vpack.c.bf16 %v7090_v21, %v7091_v39  ;;  %v6442_v47 = vpack.c.bf16 %v7085_v16, %v7086_v63  ;;  %v1719_v41 = vld [vmem:[#allocation2 + $0x28] sm:$0xff]  ;;  %v1687_v61 = vld [vmem:[%s5757_s0 + $0x30] sm:$0xff]  ;;  %v1689_v16 = vld [vmem:[%s5757_s0 + $0x40] sm:$0xff] }
 0x237   : > { %7238 = vst [vmem:[#allocation50_spill] sm:$0xff] %v6414_v0  ;;  %7239 = vst [vmem:[#allocation51_spill] sm:$0xff] %v6419_v31  ;;  %4646 = vmatpush3.bf16.msra.mxu1 %v6366_v48  ;;  %4742 = vmatpush3.bf16.msra.mxu0 %v6366_v48  ;;  %v1845_v55 = vand.u32 4294901760, %v6414_v0  ;;  %v6448_v20 = vpack.c.bf16 %v7083_v11, %v7084_v23  ;;  %v2027_v26 = vand.u32 4294901760, %v6410_v12  ;;  %v7087_v40 = vand.u32 4294901760, %v6419_v31 }
 0x238   : > { %4648 = vmatprep.subr.bf16.mxu1 %v6379_v54  ;;  %4744 = vmatprep.subr.bf16.mxu0 %v6379_v54  ;;  %7240 = vst [vmem:[#allocation52_spill] sm:$0xff] %v6436_v46  ;;  %7241 = vst [vmem:[#allocation53_spill] sm:$0xff] %v6442_v47  ;;  %v6456_v29 = vpack.c.bf16 %v7081_v1, %v7082_v28  ;;  %v6459_v4 = vpack.c.bf16 %v2013_v33, %v2006_v30  ;;  %v7263_v48 = vand.u32 4294901760, %v6344_v57 }
 0x239   : > { %7242 = vst [vmem:[#allocation54_spill] sm:$0xff] %v6448_v20  ;;  %v1846_v6 = vsub.f32 %v6414_v0, %v1845_v55  ;;  %4307 = vmatprep.mubr.f32.mxu0 %v1845_v55  ;;  %v6462_v43 = vsub.f32 %v1732_v52, %v6421_v45  ;;  %v6466_v59 = vsub.f32 %v1733_v24, %v6423_v56 }
 0x23a   : > { %7243 = vst [vmem:[#allocation55_spill] sm:$0xff] %v6456_v29  ;;  %v6469_v22 = vsub.f32 %v6396_v34, %v2020_v50  ;;  %v1702_v8 = vmul.f32 %v6346_v5, %v1685_v32  ;;  %v6474_v33 = vpack.c.bf16 %v2015_v19, %v2008_v62  ;;  %v1703_v52 = vmul.f32 %v6346_v5, %v1686_v44 }
 0x23b   : > { %7244 = vst [vmem:[#allocation56_spill] sm:$0xff] %v6462_v43  ;;  %7245 = vst [vmem:[#allocation57_spill] sm:$0xff] %v6466_v59  ;;  %4650 = vmatpush3.bf16.msra.mxu1 %v6379_v54  ;;  %4746 = vmatpush3.bf16.msra.mxu0 %v6379_v54  ;;  %v1847_v30 = vand.u32 4294901760, %v1846_v6  ;;  %v6480_v24 = vsub.f32 %v6325_v51, %v1775_v25  ;;  %v2028_v55 = vsub.f32 %v6410_v12, %v2027_v26  ;;  %v1688_v6 = vld [vmem:[%s5757_s0 + $0x38] sm:$0xff]  ;;  %v1720_v25 = vld [vmem:[#allocation2 + $0x30] sm:$0xff] }
 0x23c   : > { %4652 = vmatprep.subr.bf16.mxu1 %v6436_v46  ;;  %4748 = vmatprep.subr.bf16.mxu0 %v6436_v46  ;;  %v6486_v32 = vpack.c.bf16 %v2027_v26, %v2020_v50  ;;  %v1734_v1 = vadd.f32 %v1718_v36, %v1702_v8  ;;  %v7089_v62 = vand.u32 4294901760, %v6462_v43  ;;  %v1735_v19 = vadd.f32 %v1719_v41, %v1703_v52 }
 0x23d   : > { %4139 = vmatprep.mubr.f32.mxu1 %v1847_v30  ;;  %v2034_v44 = vand.u32 4294901760, %v6480_v24  ;;  %v6494_v51 = vsub.f32 %v6327_v10, %v1778_v3  ;;  %v6499_v28 = vsub.f32 %v6419_v31, %v7087_v40  ;;  %v7088_v50 = vand.u32 4294901760, %v6466_v59  ;;  %v1721_v30 = vld [vmem:[#allocation2 + $0x38] sm:$0xff] }
 0x23e   : > { %v6502_v26 = vand.u32 4294901760, %v1734_v1  ;;  %v1704_v36 = vmul.f32 %v6346_v5, %v1687_v61  ;;  %v6507_v8 = vand.u32 4294901760, %v1735_v19  ;;  %v1705_v41 = vmul.f32 %v6346_v5, %v1688_v6 }
 0x23f   : > { %4654 = vmatpush3.bf16.msra.mxu1 %v6436_v46  ;;  %4750 = vmatpush3.bf16.msra.mxu0 %v6436_v46  ;;  %v2035_v10 = vsub.f32 %v6480_v24, %v2034_v44  ;;  %v2041_v3 = vand.u32 4294901760, %v6494_v51  ;;  %v2022_v52 = vand.u32 4294901760, %v6469_v22  ;;  %v6521_v23 = vsub.f32 %v6332_v15, %v1781_v13 }
 0x240   : > { %7246 = vst [vmem:[#allocation58_spill] sm:$0xff] %v6502_v26  ;;  %7247 = vst [vmem:[#allocation59_spill] sm:$0xff] %v6507_v8  ;;  %4656 = vmatprep.subr.bf16.mxu1 %v6442_v47  ;;  %4752 = vmatprep.subr.bf16.mxu0 %v6442_v47  ;;  %v6516_v61 = vsub.f32 %v1734_v1, %v6502_v26  ;;  %v1736_v11 = vadd.f32 %v1720_v25, %v1704_v36  ;;  %v2029_v63 = vand.u32 4294901760, %v2028_v55  ;;  %v1722_v36 = vld [vmem:[#allocation2 + $0x40] sm:$0xff] }
 0x241   : > { %v6527_v6 = vsub.f32 %v6462_v43, %v7089_v62  ;;  %v6530_v40 = vsub.f32 %v1735_v19, %v6507_v8  ;;  %v2042_v22 = vsub.f32 %v6494_v51, %v2041_v3  ;;  %v6536_v1 = vsub.f32 %v6466_v59, %v7088_v50 }
 0x242   : > { %v6539_v13 = vand.u32 4294901760, %v1736_v11  ;;  %v1737_v25 = vadd.f32 %v1721_v30, %v1705_v41  ;;  %v6548_v50 = vsub.f32 %v6334_v9, %v1784_v60  ;;  %v1706_v62 = vmul.f32 %v6346_v5, %v1689_v16  ;;  %v1690_v16 = vld [vmem:[%s5757_s0 + $0x48] sm:$0xff] }
 0x243   : > { %4658 = vmatpush3.bf16.msra.mxu1 %v6442_v47  ;;  %4754 = vmatpush3.bf16.msra.mxu0 %v6442_v47  ;;  %v2036_v41 = vand.u32 4294901760, %v2035_v10  ;;  %v2043_v30 = vand.u32 4294901760, %v2042_v22  ;;  %v1857_v19 = vand.u32 4294901760, %v6499_v28  ;;  %v6560_v9 = vpack.c.bf16 %v2029_v63, %v2022_v52  ;;  %v1691_v47 = vld [vmem:[%s5757_s0 + $0x50] sm:$0xff] }
 0x244   : > { %7248 = vst [vmem:[#allocation60_spill] sm:$0xff] %v6539_v13  ;;  %4660 = vmatprep.subr.bf16.mxu1 %v6448_v20  ;;  %4756 = vmatprep.subr.bf16.mxu0 %v6448_v20  ;;  %v6554_v21 = vsub.f32 %v1736_v11, %v6539_v13  ;;  %v6556_v39 = vand.u32 4294901760, %v1737_v25  ;;  %v1738_v60 = vadd.f32 %v1722_v36, %v1706_v62  ;;  %v7250_v0 = vand.u32 4294901760, %v6516_v61  ;;  %v1723_v36 = vld [vmem:[#allocation2 + $0x48] sm:$0xff]  ;;  %v1693_v13 = vld [vmem:[%s5757_s0 + $0x60] sm:$0xff] }
 0x245   : > { %v7251_v63 = vand.u32 4294901760, %v6530_v40  ;;  %v6581_v62 = vpack.c.bf16 %v2041_v3, %v2034_v44  ;;  %v6592_v15 = vpack.c.bf16 %v2043_v30, %v2036_v41  ;;  %v1707_v55 = vmul.f32 %v6346_v5, %v1690_v16 }
 0x246   : > { %7249 = vst [vmem:[#allocation61_spill] sm:$0xff] %v6556_v39  ;;  %v6567_v10 = vsub.f32 %v6516_v61, %v7250_v0  ;;  %v6570_v11 = vsub.f32 %v1737_v25, %v6556_v39  ;;  %v7252_v0 = vand.u32 4294901760, %v6521_v23  ;;  %v6588_v25 = vand.u32 4294901760, %v1738_v60 }
 0x247   : > { %4662 = vmatpush3.bf16.msra.mxu1 %v6448_v20  ;;  %4758 = vmatpush3.bf16.msra.mxu0 %v6448_v20  ;;  %v6579_v28 = vsub.f32 %v6530_v40, %v7251_v63  ;;  %v7254_v44 = vand.u32 4294901760, %v6336_v7  ;;  %v7256_v46 = vand.u32 4294901760, %v6342_v49  ;;  %v1708_v30 = vmul.f32 %v6346_v5, %v1691_v47  ;;  %v1692_v63 = vld [vmem:[%s5757_s0 + $0x58] sm:$0xff] }
 0x248   : > { %v6586_v52 = vsub.f32 %v6521_v23, %v7252_v0  ;;  %7253 = vst [vmem:[#allocation62_spill] sm:$0xff] %v6588_v25  ;;  %4664 = vmatprep.subr.bf16.mxu1 %v6456_v29  ;;  %4760 = vmatprep.subr.bf16.mxu0 %v6456_v29  ;;  %v1724_v0 = vld [vmem:[#allocation2 + $0x50] sm:$0xff]  ;;  %v6603_v20 = vsub.f32 %v1738_v60, %v6588_v25  ;;  %v1887_v16 = vand.u32 4294901760, %v6567_v10  ;;  %v7258_v39 = vand.u32 4294901760, %v6548_v50  ;;  %v1725_v10 = vld [vmem:[#allocation2 + $0x58] sm:$0xff] }
 0x249   : > { %v6599_v3 = vsub.f32 %v6336_v7, %v7254_v44  ;;  %v6608_v41 = vsub.f32 %v6342_v49, %v7256_v46  ;;  %v1739_v44 = vadd.f32 %v1723_v36, %v1707_v55  ;;  %v1740_v60 = vadd.f32 %v1724_v0, %v1708_v30 }
 0x24a   : > { %v2056_v7 = vsub.f32 %v6548_v50, %v7258_v39  ;;  %v2050_v49 = vand.u32 4294901760, %v6586_v52  ;;  %v7259_v39 = vand.u32 4294901760, %v6554_v21  ;;  %v1709_v46 = vmul.f32 %v6346_v5, %v1692_v63 }
 0x24b   : > { %7255 = vst [vmem:[#allocation63_spill] sm:$0xff] %v6599_v3  ;;  %7257 = vst [vmem:[#allocation64_spill] sm:$0xff] %v6608_v41  ;;  %v2062_v22 = vand.u32 4294901760, %v6599_v3  ;;  %4666 = vmatpush3.bf16.msra.mxu1 %v6456_v29  ;;  %4762 = vmatpush3.bf16.msra.mxu0 %v6456_v29  ;;  %v2069_v47 = vand.u32 4294901760, %v6608_v41  ;;  %v6629_v36 = vand.u32 4294901760, %v1739_v44  ;;  %v7260_v29 = vand.u32 4294901760, %v6570_v11 }
 0x24c   : > { %4668 = vmatprep.subr.bf16.mxu1 %v6474_v33  ;;  %4764 = vmatprep.subr.bf16.mxu0 %v6459_v4  ;;  %v6627_v55 = vsub.f32 %v6554_v21, %v7259_v39  ;;  %v7261_v30 = vand.u32 4294901760, %v6603_v20  ;;  %v6644_v39 = vand.u32 4294901760, %v1740_v60  ;;  %v2057_v63 = vand.u32 4294901760, %v2056_v7 }
 0x24d   : > { %v2063_v52 = vsub.f32 %v6599_v3, %v2062_v22  ;;  %v6636_v0 = vsub.f32 %v6570_v11, %v7260_v29  ;;  %v2070_v54 = vsub.f32 %v6608_v41, %v2069_v47  ;;  %v7262_v3 = vand.u32 4294901760, %v6419_v31 }
 0x24e   : > { %v6641_v25 = vsub.f32 %v6603_v20, %v7261_v30  ;;  %4140 = vmatmul.mubr.f32.vlgmr.msra.gmra.mrb[0].mxu1 %v1857_v19  ;;  %v6650_v8 = vsub.f32 %v1739_v44, %v6629_v36  ;;  %v1741_v29 = vadd.f32 %v1725_v10, %v1709_v46  ;;  %v6655_v26 = vsub.f32 %v6344_v57, %v7263_v48  ;;  %v1694_v30 = vld [vmem:[%s5757_s0 + $0x68] sm:$0xff] }
 0x24f   : > { %4308 = vmatmul.mubr.f32.vlgmr.msra.gmra.mrb[0].mxu0 %v7262_v3  ;;  %4670 = vmatpush3.bf16.msra.mxu1 %v6474_v33  ;;  %v2064_v41 = vand.u32 4294901760, %v2063_v52  ;;  %v2071_v19 = vand.u32 4294901760, %v2070_v54  ;;  %v6661_v31 = vsub.f32 %v1740_v60, %v6644_v39  ;;  %v7264_v3 = vand.u32 4294901760, %v6350_v14  ;;  %v1726_v60 = vld [vmem:[#allocation2 + $0x60] sm:$0xff] }
 0x250   : > { %4766 = vmatpush3.bf16.msra.mxu0 %v6459_v4  ;;  %v7265_v44 = vand.u32 4294901760, %v6527_v6  ;;  %v7266_v57 = vand.u32 4294901760, %v6462_v43  ;;  %v6673_v33 = vand.u32 4294901760, %v1741_v29  ;;  %v2076_v54 = vand.u32 4294901760, %v6655_v26  ;;  %4672 = vmatprep.subr.bf16.mxu1 %v6560_v9 }
 0x251   : > { %v6666_v7 = vsub.f32 %v6350_v14, %v7264_v3  ;;  %v1710_v4 = vmul.f32 %v6346_v5, %v1693_v13  ;;  %4768 = vmatprep.subr.bf16.mxu0 %v6486_v32  ;;  %v1897_v14 = vand.u32 4294901760, %v6579_v28  ;;  %v1711_v10 = vmul.f32 %v6346_v5, %v1694_v30  ;;  %v1727_v30 = vld [vmem:[#allocation2 + $0x68] sm:$0xff] }
 0x252   : > { %4142 = vmatprep.mubr.f32.mxu1 %v7265_v44  ;;  %4310 = vmatprep.mubr.f32.mxu0 %v7266_v57  ;;  %v7267_v52 = vand.u32 4294901760, %v6536_v1  ;;  %v7268_v3 = vand.u32 4294901760, %v6466_v59  ;;  %v1907_v13 = vand.u32 4294901760, %v6627_v55  ;;  %v7269_v44 = vand.u32 4294901760, %v6521_v23  ;;  %v1695_v59 = vld [vmem:[%s5757_s0 + $0x70] sm:$0xff] }
 0x253   : > { %v2083_v46 = vand.u32 4294901760, %v6666_v7  ;;  %v7270_v28 = vand.u32 4294901760, %v6548_v50  ;;  %v6693_v6 = vsub.f32 %v1741_v29, %v6673_v33  ;;  %v2077_v48 = vsub.f32 %v6655_v26, %v2076_v54  ;;  %4674 = vmatpush3.bf16.msra.mxu1 %v6560_v9 }
 0x254   : > { %4143 = vmatmul.mubr.f32.gmra.mrb[2].mxu1 %v7267_v52  ;;  %4311 = vmatmul.mubr.f32.gmra.mrb[2].mxu0 %v7268_v3  ;;  %v1917_v1 = vand.u32 4294901760, %v6636_v0  ;;  %v4679_v52 = vpack.c.bf16 %v2057_v63, %v2050_v49  ;;  %v6699_v55 = vpack.c.bf16 %v2069_v47, %v2062_v22  ;;  %v7271_v29 = vand.u32 4294901760, %v6516_v61  ;;  %v1696_v0 = vld [vmem:[%s5757_s0 + $0x78] sm:$0xff] }
 0x255   : > { %v4775_v57 = vpack.c.bf16 %v7270_v28, %v7269_v44  ;;  %4770 = vmatpush3.bf16.msra.mxu0 %v6486_v32  ;;  %v2084_v3 = vsub.f32 %v6666_v7, %v2083_v46  ;;  %4145 = vmatprep.mubr.f32.mxu1 %v1887_v16  ;;  %v1927_v44 = vand.u32 4294901760, %v6641_v25  ;;  %v7272_v28 = vand.u32 4294901760, %v6650_v8 }
 0x256   : > { %4313 = vmatprep.mubr.f32.mxu0 %v7271_v29  ;;  %v6709_v43 = vpack.c.bf16 %v2071_v19, %v2064_v41  ;;  %v1742_v32 = vadd.f32 %v1726_v60, %v1710_v4  ;;  %4676 = vmatprep.subr.bf16.mxu1 %v6592_v15  ;;  %v7273_v22 = vand.u32 4294901760, %v6661_v31  ;;  %v7120_v49 = vand.u32 4294901760, %v6693_v6  ;;  %v1728_v41 = vld [vmem:[#allocation2 + $0x70] sm:$0xff] }
 0x257   : > { %v1936_v9 = vsub.f32 %v6650_v8, %v7272_v28  ;;  %4772 = vmatprep.subr.bf16.mxu0 %v6581_v62  ;;  %v1743_v25 = vadd.f32 %v1727_v30, %v1711_v10  ;;  %v7274_v47 = vand.u32 4294901760, %v6352_v38  ;;  %v7275_v19 = vand.u32 4294901760, %v6530_v40  ;;  %v1729_v30 = vld [vmem:[#allocation2 + $0x78] sm:$0xff]  ;;  %4678 = vmatpush3.bf16.msra.mxu1 %v6592_v15 }
 0x258   : > { %v6717_v16 = vsub.f32 %v6661_v31, %v7273_v22  ;;  %4146 = vmatmul.mubr.f32.gmra.mrb[4].mxu1 %v1897_v14  ;;  %v2078_v4 = vand.u32 4294901760, %v2077_v48  ;;  %v6727_v60 = vand.u32 4294901760, %v1742_v32  ;;  %v7276_v29 = vand.u32 4294901760, %v6357_v17  ;;  %4680 = vmatprep.subr.bf16.mxu1 %v4679_v52 }
 0x259   : > { %v6723_v63 = vsub.f32 %v6352_v38, %v7274_v47  ;;  %4314 = vmatmul.mubr.f32.gmra.mrb[4].mxu0 %v7275_v19  ;;  %v1712_v10 = vmul.f32 %v6346_v5, %v1695_v59  ;;  %v2085_v38 = vand.u32 4294901760, %v2084_v3  ;;  %v6737_v14 = vand.u32 4294901760, %v1743_v25  ;;  %4148 = vmatprep.mubr.f32.mxu1 %v1907_v13 }
 0x25a   : > { %v6732_v28 = vsub.f32 %v6357_v17, %v7276_v29  ;;  %4774 = vmatpush3.bf16.msra.mxu0 %v6581_v62  ;;  %v1713_v48 = vmul.f32 %v6346_v5, %v1696_v0  ;;  %v7277_v47 = vand.u32 4294901760, %v6554_v21  ;;  %v4783_v17 = vpack.c.bf16 %v2083_v46, %v2076_v54 }
 0x25b   : > { %v2090_v22 = vand.u32 4294901760, %v6723_v63  ;;  %v6744_v19 = vsub.f32 %v1742_v32, %v6727_v60  ;;  %v1744_v15 = vadd.f32 %v1728_v41, %v1712_v10  ;;  %4776 = vmatprep.subr.bf16.mxu0 %v4775_v57  ;;  %v1937_v62 = vand.u32 4294901760, %v1936_v9  ;;  %4682 = vmatpush3.bf16.msra.mxu1 %v4679_v52 }
 0x25c   : > { %4316 = vmatprep.mubr.f32.mxu0 %v7277_v47  ;;  %v2097_v59 = vand.u32 4294901760, %v6732_v28  ;;  %v6748_v3 = vsub.f32 %v1743_v25, %v6737_v14  ;;  %v1745_v5 = vadd.f32 %v1729_v30, %v1713_v48  ;;  %4149 = vmatmul.mubr.f32.gmra.mrb[6].mxu1 %v1917_v1  ;;  %v7280_v13 = vand.u32 4294901760, %v6570_v11 }
 0x25d   : > { %7278 = vst [vmem:[#allocation65_spill] sm:$0xff] %v6744_v19  ;;  %v2091_v29 = vsub.f32 %v6723_v63, %v2090_v22  ;;  %v1956_v54 = vsub.f32 %v6693_v6, %v7120_v49  ;;  %v1965_v46 = vand.u32 4294901760, %v6744_v19  ;;  %v6758_v0 = vand.u32 4294901760, %v1744_v15  ;;  %4151 = vmatprep.mubr.f32.mxu1 %v1927_v44  ;;  %4684 = vmatprep.subr.bf16.mxu1 %v6709_v43 }
 0x25e   : > { %7279 = vst [vmem:[#allocation66_spill] sm:$0xff] %v6748_v3  ;;  %4317 = vmatmul.mubr.f32.gmra.mrb[6].mxu0 %v7280_v13  ;;  %v2098_v32 = vsub.f32 %v6732_v28, %v2097_v59  ;;  %v4687_v9 = vpack.c.bf16 %v2085_v38, %v2078_v4  ;;  %v1975_v25 = vand.u32 4294901760, %v6748_v3  ;;  %v6761_v41 = vand.u32 4294901760, %v1745_v5 }
 0x25f   : > { %4778 = vmatpush3.bf16.msra.mxu0 %v4775_v57  ;;  %v7281_v1 = vand.u32 4294901760, %v6383_v42  ;;  %v7282_v30 = vand.u32 4294901760, %v6603_v20  ;;  %v1947_v48 = vand.u32 4294901760, %v6717_v16  ;;  %v1966_v47 = vsub.f32 %v6744_v19, %v1965_v46  ;;  %4686 = vmatpush3.bf16.msra.mxu1 %v6709_v43 }
 0x260   : > { %v6773_v57 = vsub.f32 %v1744_v15, %v6758_v0  ;;  %v7284_v52 = vand.u32 4294901760, %v6392_v53  ;;  %4780 = vmatprep.subr.bf16.mxu0 %v6699_v55  ;;  %v2099_v44 = vand.u32 4294901760, %v2098_v32  ;;  %v6783_v38 = vsub.f32 %v1745_v5, %v6761_v41  ;;  %4152 = vmatmul.mubr.f32.gmra.mrb[8].mxu1 %v1937_v62 }
 0x261   : > { %v6766_v10 = vsub.f32 %v6383_v42, %v7281_v1  ;;  %4319 = vmatprep.mubr.f32.mxu0 %v7282_v30  ;;  %v2092_v42 = vand.u32 4294901760, %v2091_v29  ;;  %v7285_v15 = vand.u32 4294901760, %v6650_v8  ;;  %v1957_v13 = vand.u32 4294901760, %v1956_v54  ;;  %4154 = vmatprep.mubr.f32.mxu1 %v1947_v48 }
 0x262   : > { %7283 = vst [vmem:[#allocation67_spill] sm:$0xff] %v6773_v57  ;;  %v6778_v4 = vsub.f32 %v6392_v53, %v7284_v52  ;;  %v1976_v1 = vsub.f32 %v6748_v3, %v1975_v25  ;;  %v1985_v53 = vand.u32 4294901760, %v6773_v57  ;;  %v1995_v29 = vand.u32 4294901760, %v6783_v38  ;;  %4688 = vmatprep.subr.bf16.mxu1 %v4687_v9 }
 0x263   : > { %v2104_v16 = vand.u32 4294901760, %v6766_v10  ;;  %4320 = vmatmul.mubr.f32.gmra.mrb[8].mxu0 %v7285_v15  ;;  %v7286_v62 = vand.u32 4294901760, %v6661_v31  ;;  %v1967_v32 = vand.u32 4294901760, %v1966_v47  ;;  %v4691_v15 = vpack.c.bf16 %v2099_v44, %v2092_v42  ;;  %4690 = vmatpush3.bf16.msra.mxu1 %v4687_v9  ;;  %v7298_v9 = vld [vmem:[#allocation53_spill] sm:$0xff] }
 0x264   : > { %v2111_v30 = vand.u32 4294901760, %v6778_v4  ;;  %4782 = vmatpush3.bf16.msra.mxu0 %v6699_v55  ;;  %v1986_v54 = vsub.f32 %v6773_v57, %v1985_v53  ;;  %v4787_v49 = vpack.c.bf16 %v2097_v59, %v2090_v22  ;;  %4155 = vmatmul.mubr.f32.gmra.mrb[10].mxu1 %v1957_v13  ;;  %v7287_v55 = vand.u32 4294901760, %v6693_v6 }
 0x265   : > { %v2105_v5 = vsub.f32 %v6766_v10, %v2104_v16  ;;  %4322 = vmatprep.mubr.f32.mxu0 %v7286_v62  ;;  %4784 = vmatprep.subr.bf16.mxu0 %v4783_v17  ;;  %v1977_v3 = vand.u32 4294901760, %v1976_v1  ;;  %v1996_v48 = vsub.f32 %v6783_v38, %v1995_v29  ;;  %v4699_v59 = vpack.c.bf16 %v6390_v27, %v6388_v2  ;;  %v7288_v27 = vld [vmem:[#allocation58_spill] sm:$0xff] }
 0x266   : > { %v2112_v52 = vsub.f32 %v6778_v4, %v2111_v30  ;;  %4157 = vmatprep.mubr.f32.mxu1 %v1967_v32  ;;  %v1987_v47 = vand.u32 4294901760, %v1986_v54  ;;  %4692 = vmatprep.subr.bf16.mxu1 %v4691_v15  ;;  %v4791_v57 = vpack.c.bf16 %v2111_v30, %v2104_v16  ;;  %v4707_v2 = vpack.c.bf16 %v6494_v51, %v6480_v24  ;;  %v7291_v24 = vld [vmem:[#allocation60_spill] sm:$0xff]  ;;  %v7293_v51 = vld [vmem:[#allocation63_spill] sm:$0xff] }
 0x267   : > { %v2106_v43 = vand.u32 4294901760, %v2105_v5  ;;  %4323 = vmatmul.mubr.f32.gmra.mrb[10].mxu0 %v7287_v55  ;;  %v1997_v22 = vand.u32 4294901760, %v1996_v48  ;;  %4694 = vmatpush3.bf16.msra.mxu1 %v4691_v15 }
 0x268   : > { %v2113_v19 = vand.u32 4294901760, %v2112_v52  ;;  %4786 = vmatpush3.bf16.msra.mxu0 %v4783_v17  ;;  %4325 = vmatprep.mubr.f32.mxu0 %v1965_v46  ;;  %v7294_v17 = vld [vmem:[#allocation64_spill] sm:$0xff]  ;;  %v4719_v46 = vpack.c.bf16 %v6666_v7, %v6655_v26  ;;  %v7299_v26 = vld [vmem:[#allocation54_spill] sm:$0xff]  ;;  %v4727_v7 = vpack.c.bf16 %v6778_v4, %v6766_v10  ;;  %v7302_v10 = vld [vmem:[#allocation51_spill] sm:$0xff] }
 0x269   : > { %4788 = vmatprep.subr.bf16.mxu0 %v4787_v49  ;;  %4158 = vmatmul.mubr.f32.gmra.mrb[12].mxu1 %v1977_v3  ;;  %v7295_v3 = vld [vmem:[#allocation61_spill] sm:$0xff] }
 0x26a   : > { %v4695_v62 = vpack.c.bf16 %v2113_v19, %v2106_v43  ;;  %4160 = vmatprep.mubr.f32.mxu1 %v1987_v47  ;;  %v4715_v19 = vpack.c.bf16 %v7294_v17, %v7293_v51  ;;  %v7304_v4 = vld [vmem:[#allocation57_spill] sm:$0xff] }
 0x26b   : > { %4326 = vmatmul.mubr.f32.gmra.mrb[12].mxu0 %v1975_v25  ;;  %v4723_v25 = vpack.c.bf16 %v6732_v28, %v6723_v63  ;;  %v7300_v63 = vld [vmem:[#allocation55_spill] sm:$0xff]  ;;  %v7301_v28 = vld [vmem:[#allocation50_spill] sm:$0xff] }
 0x26c   : > { %4790 = vmatpush3.bf16.msra.mxu0 %v4787_v49  ;;  %4328 = vmatprep.mubr.f32.mxu0 %v1985_v53  ;;  %v4703_v49 = vpack.c.bf16 %v6410_v12, %v6396_v34  ;;  %v4711_v34 = vpack.c.bf16 %v6548_v50, %v6521_v23  ;;  %v7290_v12 = vld [vmem:[#allocation59_spill] sm:$0xff]  ;;  %v7296_v23 = vld [vmem:[#allocation62_spill] sm:$0xff]  ;;  %v7297_v50 = vld [vmem:[#allocation52_spill] sm:$0xff] }
 0x26d   : > { %4696 = vmatprep.subr.bf16.mxu1 %v4695_v62  ;;  %4792 = vmatprep.subr.bf16.mxu0 %v4791_v57 }
 0x26e   : > { %4161 = vmatmul.mubr.f32.gmra.mrb[14].mxu1 %v1997_v22 }
 0x26f   : > { %4329 = vmatmul.mubr.f32.gmra.mrb[14].mxu0 %v1995_v29  ;;  %4698 = vmatpush3.bf16.msra.mxu1 %v4695_v62 }
 0x270   : > { %4794 = vmatpush3.bf16.msra.mxu0 %v4791_v57  ;;  %4195 = vmatprep.mubr.f32.mxu1 %v6401_v18  ;;  %v7303_v57 = vld [vmem:[#allocation56_spill] sm:$0xff] }
 0x271   : > { %4363 = vmatprep.mubr.f32.mxu0 %v6401_v18  ;;  %4700 = vmatprep.subr.bf16.mxu1 %v4699_v59 }
 0x272   : > { %4796 = vmatprep.subr.bf16.mxu0 %v6338_v37  ;;  %4196 = vmatmul.mubr.f32.vlgmr.msra.gmra.mrb[0].mxu1 %v6407_v58 }
 0x273   : > { %4364 = vmatmul.mubr.f32.vlgmr.msra.gmra.mrb[0].mxu0 %v6407_v58  ;;  %4702 = vmatpush3.bf16.msra.mxu1 %v4699_v59 }
 0x274   : > { %4798 = vmatpush3.bf16.msra.mxu0 %v6338_v37  ;;  %4198 = vmatprep.mubr.f32.mxu1 %v6421_v45  ;;  %v7289_v37 = vld [vmem:[#allocation48_spill] sm:$0xff] }
 0x275   : > { %4366 = vmatprep.mubr.f32.mxu0 %v6421_v45  ;;  %4704 = vmatprep.subr.bf16.mxu1 %v4703_v49 }
 0x276   : > { %4800 = vmatprep.subr.bf16.mxu0 %v6348_v35  ;;  %4199 = vmatmul.mubr.f32.gmra.mrb[2].mxu1 %v6423_v56 }
 0x277   : > { %4367 = vmatmul.mubr.f32.gmra.mrb[2].mxu0 %v6423_v56  ;;  %4706 = vmatpush3.bf16.msra.mxu1 %v4703_v49 }
 0x278   : > { %4802 = vmatpush3.bf16.msra.mxu0 %v6348_v35  ;;  %4201 = vmatprep.mubr.f32.mxu1 %v7288_v27  ;;  %v7292_v35 = vld [vmem:[#allocation49_spill] sm:$0xff] }
 0x279   : > { %4369 = vmatprep.mubr.f32.mxu0 %v7288_v27  ;;  %4708 = vmatprep.subr.bf16.mxu1 %v4707_v2 }
 0x27a   : > { %4804 = vmatprep.subr.bf16.mxu0 %v7289_v37  ;;  %4202 = vmatmul.mubr.f32.gmra.mrb[4].mxu1 %v7290_v12 }
 0x27b   : > { %4370 = vmatmul.mubr.f32.gmra.mrb[4].mxu0 %v7290_v12  ;;  %4710 = vmatpush3.bf16.msra.mxu1 %v4707_v2 }
 0x27c   : > { %4806 = vmatpush3.bf16.msra.mxu0 %v7289_v37  ;;  %4204 = vmatprep.mubr.f32.mxu1 %v7291_v24 }
 0x27d   : > { %4372 = vmatprep.mubr.f32.mxu0 %v7291_v24  ;;  %4712 = vmatprep.subr.bf16.mxu1 %v4711_v34 }
 0x27e   : > { %4808 = vmatprep.subr.bf16.mxu0 %v7292_v35  ;;  %4205 = vmatmul.mubr.f32.gmra.mrb[6].mxu1 %v7295_v3 }
 0x27f   : > { %4373 = vmatmul.mubr.f32.gmra.mrb[6].mxu0 %v7295_v3  ;;  %4714 = vmatpush3.bf16.msra.mxu1 %v4711_v34 }
 0x280   : > { %4810 = vmatpush3.bf16.msra.mxu0 %v7292_v35  ;;  %4207 = vmatprep.mubr.f32.mxu1 %v7296_v23 }
 0x281   : > { %4375 = vmatprep.mubr.f32.mxu0 %v7296_v23  ;;  %4716 = vmatprep.subr.bf16.mxu1 %v4715_v19 }
 0x282   : > { %4812 = vmatprep.subr.bf16.mxu0 %v7297_v50  ;;  %4208 = vmatmul.mubr.f32.gmra.mrb[8].mxu1 %v6629_v36 }
 0x283   : > { %4376 = vmatmul.mubr.f32.gmra.mrb[8].mxu0 %v6629_v36  ;;  %4718 = vmatpush3.bf16.msra.mxu1 %v4715_v19 }
 0x284   : > { %4814 = vmatpush3.bf16.msra.mxu0 %v7297_v50  ;;  %4210 = vmatprep.mubr.f32.mxu1 %v6644_v39 }
 0x285   : > { %4378 = vmatprep.mubr.f32.mxu0 %v6644_v39  ;;  %4720 = vmatprep.subr.bf16.mxu1 %v4719_v46 }
 0x286   : > { %4816 = vmatprep.subr.bf16.mxu0 %v7298_v9  ;;  %4211 = vmatmul.mubr.f32.gmra.mrb[10].mxu1 %v6673_v33 }
 0x287   : > { %4379 = vmatmul.mubr.f32.gmra.mrb[10].mxu0 %v6673_v33  ;;  %4722 = vmatpush3.bf16.msra.mxu1 %v4719_v46 }
 0x288   : > { %4818 = vmatpush3.bf16.msra.mxu0 %v7298_v9  ;;  %4213 = vmatprep.mubr.f32.mxu1 %v6727_v60 }
 0x289   : > { %4381 = vmatprep.mubr.f32.mxu0 %v6727_v60  ;;  %4724 = vmatprep.subr.bf16.mxu1 %v4723_v25 }
 0x28a   : > { %4820 = vmatprep.subr.bf16.mxu0 %v7299_v26  ;;  %4214 = vmatmul.mubr.f32.gmra.mrb[12].mxu1 %v6737_v14 }
 0x28b   : > { %4382 = vmatmul.mubr.f32.gmra.mrb[12].mxu0 %v6737_v14  ;;  %4726 = vmatpush3.bf16.msra.mxu1 %v4723_v25 }
 0x28c   : > { %4822 = vmatpush3.bf16.msra.mxu0 %v7299_v26  ;;  %4216 = vmatprep.mubr.f32.mxu1 %v6758_v0 }
 0x28d   : > { %4384 = vmatprep.mubr.f32.mxu0 %v6758_v0  ;;  %4728 = vmatprep.subr.bf16.mxu1 %v4727_v7 }
 0x28e   : > { %4824 = vmatprep.subr.bf16.mxu0 %v7300_v63  ;;  %4217 = vmatmul.mubr.f32.gmra.mrb[14].mxu1 %v6761_v41 }
 0x28f   : > { %4385 = vmatmul.mubr.f32.gmra.mrb[14].mxu0 %v6761_v41  ;;  %4730 = vmatpush3.bf16.msra.mxu1 %v4727_v7 }
 0x290   : > { %4826 = vmatpush3.bf16.msra.mxu0 %v7300_v63  ;;  %4251 = vmatprep.mubr.f32.mxu1 %v7301_v28 }
 0x291   : > { %4419 = vmatprep.mubr.f32.mxu0 %v6401_v18  ;;  %v7306_v18 = vld [vmem:[#allocation66_spill] sm:$0xff] }
 0x292   : > { %4252 = vmatmul.mubr.f32.vlgmr.msra.gmra.mrb[0].mxu1 %v7302_v10 }
 0x293   : > { %4420 = vmatmul.mubr.f32.vlgmr.msra.gmra.mrb[0].mxu0 %v6407_v58  ;;  %4254 = vmatprep.mubr.f32.mxu1 %v7303_v57  ;;  %v7307_v58 = vld [vmem:[#allocation67_spill] sm:$0xff] }
 0x294   : > { %4422 = vmatprep.mubr.f32.mxu0 %v6421_v45 }
 0x296   : > { %4255 = vmatmul.mubr.f32.gmra.mrb[2].mxu1 %v7304_v4 }
 0x297   : > { %4423 = vmatmul.mubr.f32.gmra.mrb[2].mxu0 %v6423_v56  ;;  %4257 = vmatprep.mubr.f32.mxu1 %v6516_v61 }
 0x298   : > { %4425 = vmatprep.mubr.f32.mxu0 %v7288_v27 }
 0x29a   : > { %4258 = vmatmul.mubr.f32.gmra.mrb[4].mxu1 %v6530_v40 }
 0x29b   : > { %4426 = vmatmul.mubr.f32.gmra.mrb[4].mxu0 %v7290_v12  ;;  %4260 = vmatprep.mubr.f32.mxu1 %v6554_v21  ;;  %v7305_v21 = vld [vmem:[#allocation65_spill] sm:$0xff] }
 0x29c   : > { %4428 = vmatprep.mubr.f32.mxu0 %v7291_v24 }
 0x29e   : > { %4261 = vmatmul.mubr.f32.gmra.mrb[6].mxu1 %v6570_v11 }
 0x29f   : > { %4429 = vmatmul.mubr.f32.gmra.mrb[6].mxu0 %v7295_v3  ;;  %4263 = vmatprep.mubr.f32.mxu1 %v6603_v20 }
 0x2a0   : > { %4431 = vmatprep.mubr.f32.mxu0 %v7296_v23 }
 0x2a2   : > { %4264 = vmatmul.mubr.f32.gmra.mrb[8].mxu1 %v6650_v8 }
 0x2a3   : > { %4432 = vmatmul.mubr.f32.gmra.mrb[8].mxu0 %v6629_v36  ;;  %4266 = vmatprep.mubr.f32.mxu1 %v6661_v31 }
 0x2a4   : > { %4434 = vmatprep.mubr.f32.mxu0 %v6644_v39 }
 0x2a6   : > { %4267 = vmatmul.mubr.f32.gmra.mrb[10].mxu1 %v6693_v6 }
 0x2a7   : > { %4435 = vmatmul.mubr.f32.gmra.mrb[10].mxu0 %v6673_v33  ;;  %4269 = vmatprep.mubr.f32.mxu1 %v7305_v21 }
 0x2a8   : > { %4437 = vmatprep.mubr.f32.mxu0 %v6727_v60 }
 0x2aa   : > { %4270 = vmatmul.mubr.f32.gmra.mrb[12].mxu1 %v7306_v18 }
 0x2ab   : > { %4438 = vmatmul.mubr.f32.gmra.mrb[12].mxu0 %v6737_v14  ;;  %4272 = vmatprep.mubr.f32.mxu1 %v7307_v58 }
 0x2ac   : > { %4440 = vmatprep.mubr.f32.mxu0 %v6758_v0 }
 0x2ae   : > { %4273 = vmatmul.mubr.f32.gmra.mrb[14].mxu1 %v6783_v38 }
 0x2af   : > { %4441 = vmatmul.mubr.f32.gmra.mrb[14].mxu0 %v6761_v41 }
 0x365   : > { %v4253_v31 = vpop.f32.mrb[0].mxu1 }
 0x366   : > { %v4421_v45 = vpop.f32.mrb[0].mxu0  ;;  %v2344_v20 = vpop.f32.mrb[1].mxu1 }
 0x367   : > { %v4907_v56 = vadd.f32 %v4421_v45, %v4253_v31  ;;  %v2954_v40 = vpop.f32.mrb[1].mxu0 }
 0x368   : > { %v4908_v8 = vadd.f32 %v2954_v40, %v2344_v20 }
 0x369   : > { %3049 = vst [vmem:[%s5770_s21 + $0x8] sm:$0xff] %v4907_v56  ;;  %v3087_v61 = vmul.f32 %v4907_v56, %v4907_v56  ;;  %v4256_v39 = vpop.f32.mrb[2].mxu1 }
 0x36a   : > { %3048 = vst [vmem:[%s5770_s21] sm:$0xff] %v4908_v8  ;;  %v3064_v11 = vadd.f32 %v4908_v8, %v4907_v56  ;;  %v3086_v36 = vmul.f32 %v4908_v8, %v4908_v8  ;;  %v4424_v33 = vpop.f32.mrb[2].mxu0  ;;  %v2358_v60 = vpop.f32.mrb[3].mxu1 }
 0x36b   : > { %v4909_v6 = vadd.f32 %v4424_v33, %v4256_v39  ;;  %v2966_v14 = vpop.f32.mrb[3].mxu0 }
 0x36c   : > { %v3102_v0 = vadd.f32 %v3087_v61, %v3086_v36  ;;  %v4910_v41 = vadd.f32 %v2966_v14, %v2358_v60 }
 0x36d   : > { %3051 = vst [vmem:[%s5770_s21 + $0x18] sm:$0xff] %v4909_v6  ;;  %v4259_v38 = vpop.f32.mrb[4].mxu1  ;;  %v3089_v30 = vmul.f32 %v4909_v6, %v4909_v6 }
 0x36e   : > { %3050 = vst [vmem:[%s5770_s21 + $0x10] sm:$0xff] %v4910_v41  ;;  %v3065_v42 = vadd.f32 %v4910_v41, %v3064_v11  ;;  %v3088_v44 = vmul.f32 %v4910_v41, %v4910_v41  ;;  %v4427_v16 = vpop.f32.mrb[4].mxu0  ;;  %v2372_v1 = vpop.f32.mrb[5].mxu1 }
 0x36f   : > { %v4911_v13 = vadd.f32 %v4427_v16, %v4259_v38  ;;  %v2978_v53 = vpop.f32.mrb[5].mxu0 }
 0x370   : > { %v3103_v29 = vadd.f32 %v3102_v0, %v3088_v44  ;;  %v4912_v5 = vadd.f32 %v2978_v53, %v2372_v1  ;;  %v3066_v32 = vadd.f32 %v4909_v6, %v3065_v42 }
 0x371   : > { %3053 = vst [vmem:[%s5770_s21 + $0x28] sm:$0xff] %v4911_v13  ;;  %v4262_v43 = vpop.f32.mrb[6].mxu1  ;;  %v3091_v22 = vmul.f32 %v4911_v13, %v4911_v13 }
 0x372   : > { %3052 = vst [vmem:[%s5770_s21 + $0x20] sm:$0xff] %v4912_v5  ;;  %v3067_v54 = vadd.f32 %v4912_v5, %v3066_v32  ;;  %v3090_v52 = vmul.f32 %v4912_v5, %v4912_v5  ;;  %v3104_v15 = vadd.f32 %v3103_v29, %v3089_v30  ;;  %v4430_v55 = vpop.f32.mrb[6].mxu0  ;;  %v2386_v47 = vpop.f32.mrb[7].mxu1 }
 0x373   : > { %v4913_v48 = vadd.f32 %v4430_v55, %v4262_v43  ;;  %v2990_v62 = vpop.f32.mrb[7].mxu0 }
 0x374   : > { %v3105_v59 = vadd.f32 %v3104_v15, %v3090_v52  ;;  %v4914_v49 = vadd.f32 %v2990_v62, %v2386_v47  ;;  %v3068_v2 = vadd.f32 %v4911_v13, %v3067_v54 }
 0x375   : > { %3055 = vst [vmem:[%s5770_s21 + $0x38] sm:$0xff] %v4913_v48  ;;  %v4265_v12 = vpop.f32.mrb[8].mxu1  ;;  %v3093_v19 = vmul.f32 %v4913_v48, %v4913_v48 }
 0x376   : > { %3054 = vst [vmem:[%s5770_s21 + $0x30] sm:$0xff] %v4914_v49  ;;  %v3069_v27 = vadd.f32 %v4914_v49, %v3068_v2  ;;  %v3092_v37 = vmul.f32 %v4914_v49, %v4914_v49  ;;  %v3106_v34 = vadd.f32 %v3105_v59, %v3091_v22  ;;  %v4433_v24 = vpop.f32.mrb[8].mxu0  ;;  %v2400_v51 = vpop.f32.mrb[9].mxu1 }
 0x377   : > { %v4915_v35 = vadd.f32 %v4433_v24, %v4265_v12  ;;  %v3002_v17 = vpop.f32.mrb[9].mxu0 }
 0x378   : > { %v3107_v3 = vadd.f32 %v3106_v34, %v3092_v37  ;;  %v4916_v23 = vadd.f32 %v3002_v17, %v2400_v51  ;;  %v3070_v50 = vadd.f32 %v4913_v48, %v3069_v27 }
 0x379   : > { %3057 = vst [vmem:[%s5770_s21 + $0x48] sm:$0xff] %v4915_v35  ;;  %v4268_v26 = vpop.f32.mrb[10].mxu1  ;;  %v3095_v57 = vmul.f32 %v4915_v35, %v4915_v35 }
 0x37a   : > { %3056 = vst [vmem:[%s5770_s21 + $0x40] sm:$0xff] %v4916_v23  ;;  %v3071_v46 = vadd.f32 %v4916_v23, %v3070_v50  ;;  %v3094_v9 = vmul.f32 %v4916_v23, %v4916_v23  ;;  %v3108_v25 = vadd.f32 %v3107_v3, %v3093_v19  ;;  %v4436_v7 = vpop.f32.mrb[10].mxu0  ;;  %v2414_v28 = vpop.f32.mrb[11].mxu1 }
 0x37b   : > { %v4917_v63 = vadd.f32 %v4436_v7, %v4268_v26  ;;  %v3014_v10 = vpop.f32.mrb[11].mxu0 }
 0x37c   : > { %v3109_v4 = vadd.f32 %v3108_v25, %v3094_v9  ;;  %v4918_v21 = vadd.f32 %v3014_v10, %v2414_v28  ;;  %v3072_v18 = vadd.f32 %v4915_v35, %v3071_v46 }
 0x37d   : > { %3059 = vst [vmem:[%s5770_s21 + $0x58] sm:$0xff] %v4917_v63  ;;  %v4271_v56 = vpop.f32.mrb[12].mxu1  ;;  %v3097_v11 = vmul.f32 %v4917_v63, %v4917_v63 }
 0x37e   : > { %3058 = vst [vmem:[%s5770_s21 + $0x50] sm:$0xff] %v4918_v21  ;;  %v3073_v58 = vadd.f32 %v4918_v21, %v3072_v18  ;;  %v3096_v31 = vmul.f32 %v4918_v21, %v4918_v21  ;;  %v3110_v45 = vadd.f32 %v3109_v4, %v3095_v57  ;;  %v4439_v20 = vpop.f32.mrb[12].mxu0  ;;  %v2428_v8 = vpop.f32.mrb[13].mxu1 }
 0x37f   : > { %v4919_v40 = vadd.f32 %v4439_v20, %v4271_v56  ;;  %v3026_v61 = vpop.f32.mrb[13].mxu0 }
 0x380   : > { %v3111_v36 = vadd.f32 %v3110_v45, %v3096_v31  ;;  %v4920_v39 = vadd.f32 %v3026_v61, %v2428_v8  ;;  %v3074_v33 = vadd.f32 %v4917_v63, %v3073_v58 }
 0x381   : > { %3061 = vst [vmem:[%s5770_s21 + $0x68] sm:$0xff] %v4919_v40  ;;  %v4274_v0 = vpop.f32.mrb[14].mxu1  ;;  %v3099_v16 = vmul.f32 %v4919_v40, %v4919_v40 }
 0x382   : > { %3060 = vst [vmem:[%s5770_s21 + $0x60] sm:$0xff] %v4920_v39  ;;  %v3075_v6 = vadd.f32 %v4920_v39, %v3074_v33  ;;  %v3098_v60 = vmul.f32 %v4920_v39, %v4920_v39  ;;  %v3112_v14 = vadd.f32 %v3111_v36, %v3097_v11  ;;  %v4442_v41 = vpop.f32.mrb[14].mxu0  ;;  %v2442_v44 = vpop.f32.mrb[15].mxu1 }
 0x383   : > { %v4921_v42 = vadd.f32 %v4442_v41, %v4274_v0  ;;  %v3038_v38 = vpop.f32.mrb[15].mxu0 }
 0x384   : > { %v3113_v13 = vadd.f32 %v3112_v14, %v3098_v60  ;;  %v4922_v1 = vadd.f32 %v3038_v38, %v2442_v44  ;;  %v3076_v53 = vadd.f32 %v4919_v40, %v3075_v6 }
 0x385   : > { %3063 = vst [vmem:[%s5770_s21 + $0x78] sm:$0xff] %v4921_v42  ;;  %v3101_v32 = vmul.f32 %v4921_v42, %v4921_v42 }
 0x386   : > { %3062 = vst [vmem:[%s5770_s21 + $0x70] sm:$0xff] %v4922_v1  ;;  %v3077_v30 = vadd.f32 %v4922_v1, %v3076_v53  ;;  %v3100_v29 = vmul.f32 %v4922_v1, %v4922_v1  ;;  %v3114_v5 = vadd.f32 %v3113_v13, %v3099_v16 }
 0x388   : > { %v3078_v54 = vadd.f32 %v4921_v42, %v3077_v30  ;;  %v3115_v52 = vadd.f32 %v3114_v5, %v3100_v29 }
 0x38a   : > { %v3079_v15 = vrot.slane %v3078_v54, 4  ;;  %v3116_v43 = vadd.f32 %v3115_v52, %v3101_v32 }
 0x38c   : > { %v3080_v55 = vadd.f32 %v3079_v15, %v3078_v54  ;;  %v3117_v48 = vrot.slane %v3116_v43, 4 }
 0x38e   : > { %v3081_v47 = vrot.slane %v3080_v55, 2  ;;  %v3118_v62 = vadd.f32 %v3117_v48, %v3116_v43 }
 0x390   : > { %v3082_v22 = vadd.f32 %v3081_v47, %v3080_v55  ;;  %v3119_v59 = vrot.slane %v3118_v62, 2 }
 0x392   : > { %v3083_v49 = vrot.slane %v3082_v22, 1  ;;  %v3120_v2 = vadd.f32 %v3119_v59, %v3118_v62 }
 0x394   : > { %v3084_v27 = vadd.f32 %v3083_v49, %v3082_v22  ;;  %v3121_v37 = vrot.slane %v3120_v2, 1 }
 0x396   : > { %3085 = vst [vmem:[%s5772_s29] sm:$0x1] %v3084_v27  ;;  %v3122_v34 = vadd.f32 %v3121_v37, %v3120_v2 }
 0x398   : > { %3123 = vst [vmem:[%s5772_s29 + $0x1] sm:$0x1] %v3122_v34 }
 0x399 PF: > { %s7308_s15 = sld [smem:[#allocation22_spill]]  ;;  %s7309_s23 = sld [smem:[#allocation70_spill]] }
 0x39a   : > { %s3143_s17 = sshll.u32 %s5770_s21, 4  ;;  %s3125_s13 = scalar_lea.sflag [#allocation6], %s5754_s14  ;;  %s6923_s17 = int_to_ptr.vmem [resolvable:$true] %s3143_s17 }
 0x39b   : > { %s5243_s0 = scalar_lea.vmem %s6923_s17, 2048  ;;  %s5420_s11 = smov [#allocation11]  }
 0x39c   : > { %p5244_p3 = scmp.ne.s32.totalorder %s6923_s17, %s5243_s0  ;;  %s5247_s1 = sshll.u32 %s5420_s11, 4  ;;  %s5248_s1 = int_to_ptr.vmem [resolvable:$false] %s5247_s1 }
 0x39d   : > { %s5249_s10 = scalar_lea.vmem %s5248_s1, 4096  ;;  %p5250_p4 = scmp.lt.s32.totalorder %s6923_s17, %s5248_s1 }
 0x39e   : > { %p5245_p10 = pnand %p5244_p3, %p5693_p1  ;;  %p5251_p11 = scmp.lt.s32.totalorder %s5249_s10, %s5243_s0 }
 0x39f   : > { %s3347_s20 = sshll.u32 %s7308_s15, 11  ;;  %s7310_s2 = smov %s7309_s23 }
 0x3a0   : > { %s6920_s30 = scalar_lea.hbm %s7309_s23, %s3347_s20  ;;  %p5246_p0 = pneg %p5245_p10 }
 0x3a1   : > { %p5252_p6 = por %p5251_p11, %p5250_p4 }
 0x3a3   : > { %p5253_p8 = pnand %p5252_p6, %p5246_p0 }
 0x3a5   : > { %5256 = shalt.err (!%p5253_p8)
}
 0x3a6   : > { %s5257_s21 = scalar_lea.hbm %s6920_s30, 2048  ;;  %s5261_s18 = scalar_lea.hbm %s7310_s2, 4096 }
 0x3a7   : > { %p5258_p2 = scmp.ne.s32.totalorder %s6920_s30, %s5257_s21  ;;  %p5262_p9 = scmp.lt.u32.totalorder %s6920_s30, %s7310_s2 }
 0x3a8   : > { %p5263_p12 = scmp.lt.u32.totalorder %s5261_s18, %s5257_s21  ;;  %p5265_p3 = scmp.lt.u32.totalorder %s5257_s21, %s6920_s30 }
 0x3a9   : > { %p5259_p13 = pnand %p5258_p2, %p5693_p1 }
 0x3aa   : > { %p5264_p7 = por %p5263_p12, %p5262_p9 }
 0x3ab   : > { %p5260_p5 = pneg %p5259_p13 }
 0x3ac   : > { %p5266_p10 = por %p5265_p3, %p5264_p7 }
 0x3ae   : > { %p5267_p0 = pnand %p5266_p10, %p5260_p5 }
 0x3b0   : > { %5270 = shalt.err (!%p5267_p0)
}
 0x3b1   : > { %s5421_s19 = smov 128   ;;  %s5422_s26 = smov 8  }
 0x3b2   : > { %4999 = dma.vmem_to_hbm [thread:$0]  (%p5693_p1), %s6923_s17, 2048, %s6920_s30, %s3125_s13, %s5421_s19, %s5421_s19, %s5422_s26  }
 0x3b3   : > { %s3342_s23 = sshll.u32 %s7308_s15, 5  ;;  %s3159_s0 = sshll.u32 %s5772_s29, 4  ;;  %s3160_s0 = int_to_ptr.vmem [resolvable:$true] %s3159_s0 }
 0x3b4   : > { %s7311_s10 = sld [smem:[#allocation71_spill]]  ;;  %s3130_s9 = scalar_lea.sflag [#allocation13], %s5754_s14 }
 0x3b5   : > { %s5271_s12 = scalar_lea.vmem %s3160_s0, 32  ;;  %s5423_s18 = smov [#allocation12]  }
 0x3b6   : > { %p5272_p4 = scmp.ne.s32.totalorder %s3160_s0, %s5271_s12  ;;  %s5275_s22 = sshll.u32 %s5423_s18, 4  ;;  %s5276_s22 = int_to_ptr.vmem [resolvable:$false] %s5275_s22 }
 0x3b7   : > { %s5277_s20 = scalar_lea.vmem %s5276_s22, 64  ;;  %p5278_p8 = scmp.lt.s32.totalorder %s3160_s0, %s5276_s22 }
 0x3b8   : > { %p5273_p11 = pnand %p5272_p4, %p5693_p1  ;;  %p5279_p2 = scmp.lt.s32.totalorder %s5277_s20, %s5271_s12 }
 0x3ba   : > { %s6954_s21 = scalar_lea.hbm %s7311_s10, %s3342_s23  ;;  %p5274_p6 = pneg %p5273_p11 }
 0x3bb   : > { %p5280_p13 = por %p5279_p2, %p5278_p8 }
 0x3bd   : > { %p5281_p5 = pnand %p5280_p13, %p5274_p6 }
 0x3bf   : > { %5284 = shalt.err (!%p5281_p5)
}
 0x3c0   : > { %s5285_s14 = scalar_lea.hbm %s6954_s21, 32  ;;  %s5289_s30 = scalar_lea.hbm %s7311_s10, 64 }
 0x3c1   : > { %p5286_p9 = scmp.ne.s32.totalorder %s6954_s21, %s5285_s14  ;;  %p5290_p3 = scmp.lt.u32.totalorder %s6954_s21, %s7311_s10 }
 0x3c2   : > { %p5291_p10 = scmp.lt.u32.totalorder %s5289_s30, %s5285_s14  ;;  %p5293_p4 = scmp.lt.u32.totalorder %s5285_s14, %s6954_s21 }
 0x3c3   : > { %p5287_p12 = pnand %p5286_p9, %p5693_p1 }
 0x3c4   : > { %p5292_p0 = por %p5291_p10, %p5290_p3 }
 0x3c5   : > { %p5288_p7 = pneg %p5287_p12 }
 0x3c6   : > { %p5294_p11 = por %p5293_p4, %p5292_p0 }
 0x3c8   : > { %p5295_p6 = pnand %p5294_p11, %p5288_p7 }
 0x3ca   : > { %5298 = shalt.err (!%p5295_p6)
}
 0x3cb   : > { %5000 = dma.vmem_to_hbm [thread:$0]  (%p5693_p1), %s3160_s0, 32, %s6954_s21, %s3130_s9  }
 0x3cc PF: > { %s7312_s19 = sld [smem:[#allocation20_spill]]  ;;  %s7313_s26 = sld [smem:[#allocation24_spill]] }
 0x3cd   : > { %p5029_p8 = scmp.ge.s32.totalorder %s5409_s8, 2 }
 0x3d2   : > { %s3171_s23 = sand.u32 1, %s7312_s19   ;;  %p7314_p2 = scmp.ne.s32.totalorder %s7313_s26, 0 }
 0x3d3   : > { %s3172_s11 = scalar_lea.sflag [#allocation6], %s3171_s23 }
 0x3d4   : > { %p5018_p13 = pnand %p5029_p8, %p7314_p2 }
 0x3d6   : > { %5360 = dma.done.wait (!%p5018_p13), %s3172_s11, 2048  }
 0x3d7   : > { %5362 = vsyncadd (!%p5018_p13), %s3172_s11, 4294965248  ;;  %s3181_s1 = scalar_lea.sflag [#allocation13], %s3171_s23 }
 0x3d8   : > { %5364 = dma.done.wait (!%p5018_p13), %s3181_s1, 32  }
 0x3d9   : > { %5366 = vsyncadd (!%p5018_p13), %s3181_s1, 4294967264  ;;  %s28_s8 = sadd.s32 1, %s5409_s8   ;;  %s7315_s0 = sld [smem:[#allocation23_spill]] }
 0x3da   : > { %p25_p5 = scmp.ge.s32.totalorder %s28_s8, 6   ;;  %s7316_s30 = sld [smem:[#allocation25_spill]] }
 0x3db   : > { %s7317_s16 = sld [smem:[#allocation26_spill]]  ;;  %s7318_s23 = smov %s5373_s24 }
 0x3dc   : > { %s7319_s24 = smov %s5377_s25  ;;  %s7320_s25 = smov %s5683_s5 }
 0x3dd   : > { %s7321_s26 = smov %s5385_s27  ;;  %s7322_s27 = smov %s5389_s28 }
 0x3de   : > { %s7323_s28 = smov %s5609_s6  ;;  %s7324_s29 = smov %s5405_s7 }
 0x3df   :  { %27 = sbr.rel (!%p25_p5) target bundleno = 18 (0x12), region = 130 }
 0x3e1   : > { %s7325_s7 = smov %s7317_s16 }
 0x3e6   :  { %3186 = vsyncpa [#allocation5], 1 }
 0x3e7   :  { %3188 = vsyncpa [#allocation5 + $0x1], 1 }
 0x3e8   :  { %3189 = vsyncpa [#allocation8], 1 }
 0x3e9   :  { %3190 = vsyncpa [#allocation6], 1 }
 0x3ea   :  { %3192 = vsyncpa [#allocation6 + $0x1], 1 }
 0x3eb   :  { %3193 = vsyncpa [#allocation13], 1 }
 0x3ec   :  { %3195 = vsyncpa [#allocation13 + $0x1], 1 }

</bundles_post_ra>
